<compile_context>
chip_gen: v7x
topology: tpu7x:2x2x1
jax: 0.10.0
libtpu: 0.0.40
codegen_flags: <defaults>
</compile_context>

<pallas_src>
import numpy as np

import jax
import jax.numpy as jnp
from jax import lax
from jax.experimental import pallas as pl
from jax.experimental.pallas import tpu as pltpu


# ----------------------------------------------------------------------------
# Small helpers.
# ----------------------------------------------------------------------------
def _ds(start, num, step=1):
    """pl.ds helper that omits the stride when it is irrelevant."""
    if step == 1 or num == 1:
        return pl.ds(start, num)
    return pl.ds(start, num, stride=step)


def _pack_factor(himg, row_width):
    """How many image rows to fold into lanes so HBM stores are 128-lane dense."""
    if row_width >= 128 or 128 % row_width != 0:
        return 1
    p = 128 // row_width
    return p if himg % p == 0 else 1


# ----------------------------------------------------------------------------
# Fused encoder kernel (whole forward pass, all images, single invocation).
# ----------------------------------------------------------------------------
def _make_encoder_kernel(N, H, W, Cin, L, KH, with_adds):
    pad = (KH - 1) // 2
    H1, W1, H2, W2 = H // 2, W // 2, H // 4, W // 4
    slot0, slot1, slot2 = H + 2 * pad, H1 + 2 * pad, H2 + 2 * pad
    # Conv output row counts over the whole stacked-image buffers (includes a
    # few discarded "straddle" rows at image boundaries).
    M0 = N * slot0 - 2 * pad           # stride-1, level 0
    Ms1 = M0 // 2                      # stride-2, level 0 -> 1
    M1 = N * slot1 - 2 * pad           # stride-1, level 1
    Ms2 = M1 // 2                      # stride-2, level 1 -> 2
    M2 = N * slot2 - 2 * pad           # stride-1, level 2
    Wd1, Wd2 = W1 * L, W2 * L
    pack1, pack2 = _pack_factor(H1, Wd1), _pack_factor(H2, Wd2)

    def kernel(*refs):
        it = iter(refs)
        x_ref = next(it)
        if with_adds:
            a0_ref, a1_ref, a2_ref = next(it), next(it), next(it)
        w = [next(it) for _ in range(6)]   # banded weights (KH, Win*Ci, Wo*Co)
        b = [next(it) for _ in range(6)]   # bias rows (1, Wo*Co)
        x0_ref, x1_ref, x2_ref = next(it), next(it), next(it)
        p_in, p0, p1, p2, tA, tB, tC = (next(it) for _ in range(7))

        f32 = jnp.float32
        relu = lambda v: jnp.maximum(v, 0.0)

        def zero_halos(p_ref, slot, himg):
            # Scratch VMEM is NOT zero-initialised: zero the halo rows ONCE.
            # Every later write covers exactly `himg` interior rows per image,
            # so halos stay zero for the whole kernel.
            width = p_ref.shape[1]
            z = jnp.zeros((pad, width), f32)
            for n in range(N):
                p_ref[pl.ds(n * slot, pad), :] = z
                p_ref[pl.ds(n * slot + pad + himg, pad), :] = z

        def conv(p_ref, w_ref, b_ref, t_ref, mout, stride):
            # One MXU matmul per kh tap over the WHOLE stacked image buffer;
            # kw shift, horizontal zero padding and the column stride are
            # folded into the banded weight.  Vertical stride is a strided
            # row read.  Accumulator starts at the broadcast bias (hoisted).
            ncols = w_ref.shape[-1]
            acc = jnp.broadcast_to(b_ref[...], (mout, ncols))
            for kh in range(KH):
                rows = p_ref[_ds(kh, mout, stride), :]
                acc = acc + jnp.dot(rows, w_ref[kh],
                                    preferred_element_type=f32)
            t_ref[pl.ds(0, mout), :] = acc

        def store_packed(out_ref, t_ref, slot, himg, row_w, pack, dtype):
            # Fold `pack` adjacent rows into lanes so the HBM output slab is
            # 128 lanes wide, skipping the straddle rows at image boundaries.
            # pack == 1 degenerates to a plain per-image copy.
            hq = himg // pack
            for n in range(N):
                for q in range(pack):
                    out_ref[pl.ds(n * hq, hq), q * row_w:(q + 1) * row_w] = (
                        t_ref[_ds(n * slot + q, hq, pack), :].astype(dtype))

        # ---- one-time halo zeroing + input load -----------------------------
        zero_halos(p_in, slot0, H)
        zero_halos(p0, slot0, H)
        zero_halos(p1, slot1, H1)
        zero_halos(p2, slot2, H2)
        for n in range(N):
            p_in[pl.ds(n * slot0 + pad, H), :] = (
                x_ref[pl.ds(n * H, H), :].astype(f32))

        # ---- init: Conv -> ReLU -> Conv (+ optional skip add) ---------------
        conv(p_in, w[0], b[0], tA, M0, 1)
        for n in range(N):
            p0[pl.ds(n * slot0 + pad, H), :] = relu(tA[pl.ds(n * slot0, H), :])
        conv(p0, w[1], b[1], tA, M0, 1)
        for n in range(N):
            v = tA[pl.ds(n * slot0, H), :]
            if with_adds:
                v = v + a0_ref[pl.ds(n * H, H), :]
            # output store and relu-repack share the single load of `v`
            x0_ref[pl.ds(n * H, H), :] = v.astype(x0_ref.dtype)
            p0[pl.ds(n * slot0 + pad, H), :] = relu(v)

        # ---- enc1: ReLU -> Conv(s2) -> ReLU -> Conv (+ optional skip) -------
        conv(p0, w[2], b[2], tB, Ms1, 2)
        for n in range(N):
            p1[pl.ds(n * slot1 + pad, H1), :] = relu(
                tB[pl.ds(n * (slot0 // 2), H1), :])
        conv(p1, w[3], b[3], tB, M1, 1)
        if with_adds:
            for n in range(N):
                tB[pl.ds(n * slot1, H1), :] = (
                    tB[pl.ds(n * slot1, H1), :]
                    + a1_ref[pl.ds(n * H1, H1), :])
        for n in range(N):
            p1[pl.ds(n * slot1 + pad, H1), :] = relu(
                tB[pl.ds(n * slot1, H1), :])
        store_packed(x1_ref, tB, slot1, H1, Wd1, pack1, x1_ref.dtype)

        # ---- enc2: ReLU -> Conv(s2) -> ReLU -> Conv (+ optional skip) -------
        conv(p1, w[4], b[4], tC, Ms2, 2)
        for n in range(N):
            p2[pl.ds(n * slot2 + pad, H2), :] = relu(
                tC[pl.ds(n * (slot1 // 2), H2), :])
        conv(p2, w[5], b[5], tC, M2, 1)
        if with_adds:
            for n in range(N):
                tC[pl.ds(n * slot2, H2), :] = (
                    tC[pl.ds(n * slot2, H2), :]
                    + a2_ref[pl.ds(n * H2, H2), :])
        store_packed(x2_ref, tC, slot2, H2, Wd2, pack2, x2_ref.dtype)

    return kernel


# ----------------------------------------------------------------------------
# Banded-weight construction (pure JAX, exact f32; done on tiny tensors).
#   Wband[kh, wi*Cin + ci, wo*Cout + co] = W[kh, kw, ci, co]
#     where wi = wo*stride + kw - pad (zero where out of range).
# ----------------------------------------------------------------------------
def _kw_selector(KW, win, stride):
    pad = (KW - 1) // 2
    wout = (win + 2 * pad - KW) // stride + 1
    sel = np.zeros((KW, win, wout), np.float32)
    for kw in range(KW):
        for wo in range(wout):
            wi = wo * stride + kw - pad
            if 0 <= wi < win:
                sel[kw, wi, wo] = 1.0
    return jnp.asarray(sel), wout


def _band_matrix(w, sel):
    # w: (KH, KW, Cin, Cout); sel: (KW, Win, Wout) -> (KH, Win*Cin, Wout*Cout)
    KH, KW, Cin, Cout = w.shape
    _, Win, Wout = sel.shape
    band = (w[:, :, None, :, None, :] * sel[None, :, :, None, :, None]).sum(1)
    return band.reshape(KH, Win * Cin, Wout * Cout)


# ----------------------------------------------------------------------------
# Wrapper: one fused, grid-less pallas_call for the whole encoder.
# ----------------------------------------------------------------------------
def depth_encoder_pallas(x_nhwc, params, filter_size, adds=None):
    N, H, W, Cin = x_nhwc.shape
    L = params["init0"][0].shape[-1]
    KH = filter_size
    assert KH % 2 == 1, "odd filter expected"
    assert H % 4 == 0 and W % 4 == 0, "H, W must be divisible by 4"
    pad = (KH - 1) // 2
    H1, W1, H2, W2 = H // 2, W // 2, H // 4, W // 4
    slot0, slot1, slot2 = H + 2 * pad, H1 + 2 * pad, H2 + 2 * pad
    Wd0, Wd1, Wd2 = W * L, W1 * L, W2 * L
    pack1, pack2 = _pack_factor(H1, Wd1), _pack_factor(H2, Wd2)

    layer_cfg = [
        ("init0", W, 1), ("init1", W, 1),
        ("enc1_0", W, 2), ("enc1_1", W1, 1),
        ("enc2_0", W1, 2), ("enc2_1", W2, 1),
    ]
    wmats, brows = [], []
    for name, win, stride in layer_cfg:
        wgt, bia = params[name]
        sel, wout = _kw_selector(KH, win, stride)
        wmats.append(_band_matrix(wgt, sel))
        brows.append(jnp.tile(bia, wout).reshape(1, wout * wgt.shape[-1]))

    x2d = x_nhwc.reshape(N * H, W * Cin)

    with_adds = adds is not None
    operands = [x2d]
    if with_adds:
        a0, a1, a2 = adds
        operands += [a0.reshape(N * H, Wd0),
                     a1.reshape(N * H1, Wd1),
                     a2.reshape(N * H2, Wd2)]
    operands += wmats + brows

    # No grid: every operand / output is a whole array resident in VMEM; the
    # weights therefore exist in VMEM exactly once (no double buffering).
    vmem = pl.BlockSpec(memory_space=pltpu.MemorySpace.VMEM)
    in_specs = [vmem] * len(operands)

    out_shapes = (
        jax.ShapeDtypeStruct((N * H, Wd0), x_nhwc.dtype),
        jax.ShapeDtypeStruct((N * H1 // pack1, pack1 * Wd1), x_nhwc.dtype),
        jax.ShapeDtypeStruct((N * H2 // pack2, pack2 * Wd2), x_nhwc.dtype),
    )
    out_specs = (vmem, vmem, vmem)

    M0 = N * slot0 - 2 * pad
    M1 = N * slot1 - 2 * pad
    M2 = N * slot2 - 2 * pad
    Ms1, Ms2 = M0 // 2, M1 // 2

    kernel = _make_encoder_kernel(N, H, W, Cin, L, KH, with_adds)

    x0, x1, x2 = pl.pallas_call(
        kernel,
        out_shape=out_shapes,
        in_specs=in_specs,
        out_specs=out_specs,
        scratch_shapes=[
            pltpu.VMEM((N * slot0, W * Cin), jnp.float32),   # p_in (stacked+halo)
            pltpu.VMEM((N * slot0, Wd0), jnp.float32),       # p0
            pltpu.VMEM((N * slot1, Wd1), jnp.float32),       # p1
            pltpu.VMEM((N * slot2, Wd2), jnp.float32),       # p2
            pltpu.VMEM((M0, Wd0), jnp.float32),              # tA conv-out, lvl0
            pltpu.VMEM((max(Ms1, M1), Wd1), jnp.float32),    # tB conv-out, lvl1
            pltpu.VMEM((max(Ms2, M2), Wd2), jnp.float32),    # tC conv-out, lvl2
        ],
    )(*operands)

    # Packed slabs are row-major identical to NHWC -> reshapes are free views.
    return (x0.reshape(N, H, W, L),
            x1.reshape(N, H1, W1, L),
            x2.reshape(N, H2, W2, L))


# ----------------------------------------------------------------------------
# Plain-JAX bilinear upsample, align_corners=True (only for pre_x2/x3/x4).
# ----------------------------------------------------------------------------
def upsample_bilinear_align_corners(x, scale):
    N, H, W, C = x.shape
    Ho, Wo = int(H * scale), int(W * scale)

    def coords(n_in, n_out):
        if n_out == 1 or n_in == 1:
            return jnp.zeros((n_out,), jnp.float32)
        return jnp.arange(n_out, dtype=jnp.float32) * (n_in - 1) / (n_out - 1)

    ys, xs = coords(H, Ho), coords(W, Wo)
    y0 = jnp.clip(jnp.floor(ys).astype(jnp.int32), 0, H - 1)
    y1 = jnp.clip(y0 + 1, 0, H - 1)
    x0 = jnp.clip(jnp.floor(xs).astype(jnp.int32), 0, W - 1)
    x1 = jnp.clip(x0 + 1, 0, W - 1)
    wy = (ys - y0.astype(jnp.float32))[None, :, None, None]
    wx = (xs - x0.astype(jnp.float32))[None, None, :, None]

    g = lambda yi, xi: x[:, yi][:, :, xi]
    top = g(y0, x0) * (1 - wx) + g(y0, x1) * wx
    bot = g(y1, x0) * (1 - wx) + g(y1, x1) * wx
    return top * (1 - wy) + bot * wy


# ----------------------------------------------------------------------------
# DepthEncoder module (xavier_normal_ weights, bias = 0.01, as in PyTorch).
# ----------------------------------------------------------------------------
class DepthEncoder:
    def __init__(self, in_layers, layers, filter_size, key):
        self.layers = layers
        self.filter_size = filter_size
        k = filter_size
        names_and_cins = [
            ("init0", in_layers), ("init1", layers),
            ("enc1_0", layers), ("enc1_1", layers),
            ("enc2_0", layers), ("enc2_1", layers),
        ]
        self.params = {}
        keys = jax.random.split(key, len(names_and_cins))
        for (name, cin), kk in zip(names_and_cins, keys):
            fan_in = cin * k * k
            fan_out = layers * k * k
            std = (2.0 / (fan_in + fan_out)) ** 0.5  # xavier_normal_, gain=1
            w = std * jax.random.normal(kk, (k, k, cin, layers), jnp.float32)
            b = jnp.full((layers,), 0.01, jnp.float32)
            self.params[name] = (w, b)

    def __call__(self, x, scale=2, pre_x2=None, pre_x3=None, pre_x4=None):
        N, H, W, _ = x.shape
        L = self.layers
        adds = None
        if (pre_x2 is not None) or (pre_x3 is not None) or (pre_x4 is not None):
            def mk(pre, h, w):
                if pre is None:
                    return jnp.zeros((N, h, w, L), x.dtype)
                return (scale * upsample_bilinear_align_corners(pre, scale)
                        ).astype(x.dtype)
            adds = (mk(pre_x4, H, W),
                    mk(pre_x3, H // 2, W // 2),
                    mk(pre_x2, H // 4, W // 4))
        return depth_encoder_pallas(x, self.params, self.filter_size, adds=adds)


# ----------------------------------------------------------------------------
# Pure-JAX reference (lax.conv, full f32 precision) used as correctness check.
# ----------------------------------------------------------------------------
def _ref_conv(x, w, b, stride, relu_in):
    if relu_in:
        x = jnp.maximum(x, 0.0)
    pad = (w.shape[0] - 1) // 2
    y = lax.conv_general_dilated(
        x, w, window_strides=(stride, stride),
        padding=((pad, pad), (pad, pad)),
        dimension_numbers=("NHWC", "HWIO", "NHWC"),
        precision=lax.Precision.HIGHEST,
    )
    return y + b.reshape(1, 1, 1, -1)


def _ref_forward(model, x, scale=2, pre_x2=None, pre_x3=None, pre_x4=None):
    p = model.params
    x0 = _ref_conv(x, *p["init0"], 1, False)
    x0 = _ref_conv(x0, *p["init1"], 1, True)
    if pre_x4 is not None:
        x0 = x0 + scale * upsample_bilinear_align_corners(pre_x4, scale)
    x1 = _ref_conv(x0, *p["enc1_0"], 2, True)
    x1 = _ref_conv(x1, *p["enc1_1"], 1, True)
    if pre_x3 is not None:
        x1 = x1 + scale * upsample_bilinear_align_corners(pre_x3, scale)
    x2 = _ref_conv(x1, *p["enc2_0"], 2, True)
    x2 = _ref_conv(x2, *p["enc2_1"], 1, True)
    if pre_x2 is not None:
        x2 = x2 + scale * upsample_bilinear_align_corners(pre_x2, scale)
    return x0, x1, x2


if __name__ == "__main__":
    key = jax.random.PRNGKey(0)
    k_param, k_x, k_p2, k_p3, k_p4 = jax.random.split(key, 5)

    in_layers, layers, filter_size = 4, 8, 3
    N, H, W = 2, 16, 16

    model = DepthEncoder(in_layers, layers, filter_size, k_param)
    # NHWC input; equivalent PyTorch NCHW shape is (2, 4, 16, 16).
    x = jax.random.normal(k_x, (N, H, W, in_layers), jnp.float32)

    # ---- default path: single fused, grid-less pallas_call ----
    x0, x1, x2 = model(x)
    jax.block_until_ready((x0, x1, x2))
    assert x0.shape == (N, H, W, layers)
    assert x1.shape == (N, H // 2, W // 2, layers)
    assert x2.shape == (N, H // 4, W // 4, layers)

    r0, r1, r2 = _ref_forward(model, x)
    for got, ref in ((x0, r0), (x1, r1), (x2, r2)):
        err = float(jnp.max(jnp.abs(got - ref)))
        assert jnp.allclose(got, ref, atol=1e-4, rtol=1e-4), err

    # ---- skip-connection path (pre_x2/x3/x4 supplied) ----
    pre_x4 = jax.random.normal(k_p4, (N, H // 2, W // 2, layers), jnp.float32)
    pre_x3 = jax.random.normal(k_p3, (N, H // 4, W // 4, layers), jnp.float32)
    pre_x2 = jax.random.normal(k_p2, (N, H // 8, W // 8, layers), jnp.float32)
    y0, y1, y2 = model(x, scale=2, pre_x2=pre_x2, pre_x3=pre_x3, pre_x4=pre_x4)
    jax.block_until_ready((y0, y1, y2))
    s0, s1, s2 = _ref_forward(model, x, scale=2, pre_x2=pre_x2,
                              pre_x3=pre_x3, pre_x4=pre_x4)
    for got, ref in ((y0, s0), (y1, s1), (y2, s2)):
        err = float(jnp.max(jnp.abs(got - ref)))
        assert jnp.allclose(got, ref, atol=1e-4, rtol=1e-4), err

    print("KERNEL_OK")
</pallas_src>

<mosaic_0001>
module attributes {stable_mosaic.version = 11 : i64} {
  func.func @kernel(%arg0: memref<32x64xf32, #tpu.memory_space<vmem>>, %arg1: memref<3x64x128xf32, #tpu.memory_space<vmem>>, %arg2: memref<3x128x128xf32, #tpu.memory_space<vmem>>, %arg3: memref<3x128x64xf32, #tpu.memory_space<vmem>>, %arg4: memref<3x64x64xf32, #tpu.memory_space<vmem>>, %arg5: memref<3x64x32xf32, #tpu.memory_space<vmem>>, %arg6: memref<3x32x32xf32, #tpu.memory_space<vmem>>, %arg7: memref<1x128xf32, #tpu.memory_space<vmem>>, %arg8: memref<1x128xf32, #tpu.memory_space<vmem>>, %arg9: memref<1x64xf32, #tpu.memory_space<vmem>>, %arg10: memref<1x64xf32, #tpu.memory_space<vmem>>, %arg11: memref<1x32xf32, #tpu.memory_space<vmem>>, %arg12: memref<1x32xf32, #tpu.memory_space<vmem>>, %arg13: memref<32x128xf32, #tpu.memory_space<vmem>>, %arg14: memref<8x128xf32, #tpu.memory_space<vmem>>, %arg15: memref<2x128xf32, #tpu.memory_space<vmem>>, %arg16: memref<36x64xf32, #tpu.memory_space<vmem>>, %arg17: memref<36x128xf32, #tpu.memory_space<vmem>>, %arg18: memref<20x64xf32, #tpu.memory_space<vmem>>, %arg19: memref<12x32xf32, #tpu.memory_space<vmem>>, %arg20: memref<34x128xf32, #tpu.memory_space<vmem>>, %arg21: memref<18x64xf32, #tpu.memory_space<vmem>>, %arg22: memref<10x32xf32, #tpu.memory_space<vmem>>) attributes {dimension_semantics = [], scalar_prefetch = 0 : i64, scratch_operands = 7 : i64, tpu.core_type = #tpu.core_type<tc>} {
    %cst = arith.constant 0.000000e+00 : f32
    %0 = vector.broadcast %cst : f32 to vector<1x64xf32>
    %c0 = arith.constant 0 : index
    %c0_0 = arith.constant 0 : index
    %1 = vector.load %arg16[%c0, %c0_0] : memref<36x64xf32, #tpu.memory_space<vmem>>, vector<1x64xf32>
    tpu.vector_store %arg16[%c0, %c0_0], %0 {strides = array<i32>} : memref<36x64xf32, #tpu.memory_space<vmem>>, vector<1x64xf32>,
    %c17 = arith.constant 17 : index
    %c0_1 = arith.constant 0 : index
    %2 = vector.load %arg16[%c17, %c0_1] : memref<36x64xf32, #tpu.memory_space<vmem>>, vector<1x64xf32>
    tpu.vector_store %arg16[%c17, %c0_1], %0 {strides = array<i32>} : memref<36x64xf32, #tpu.memory_space<vmem>>, vector<1x64xf32>,
    %c18 = arith.constant 18 : index
    %c0_2 = arith.constant 0 : index
    %3 = vector.load %arg16[%c18, %c0_2] : memref<36x64xf32, #tpu.memory_space<vmem>>, vector<1x64xf32>
    tpu.vector_store %arg16[%c18, %c0_2], %0 {strides = array<i32>} : memref<36x64xf32, #tpu.memory_space<vmem>>, vector<1x64xf32>,
    %c35 = arith.constant 35 : index
    %c0_3 = arith.constant 0 : index
    %4 = vector.load %arg16[%c35, %c0_3] : memref<36x64xf32, #tpu.memory_space<vmem>>, vector<1x64xf32>
    tpu.vector_store %arg16[%c35, %c0_3], %0 {strides = array<i32>} : memref<36x64xf32, #tpu.memory_space<vmem>>, vector<1x64xf32>,
    %cst_4 = arith.constant 0.000000e+00 : f32
    %5 = vector.broadcast %cst_4 : f32 to vector<1x128xf32>
    %c0_5 = arith.constant 0 : index
    %c0_6 = arith.constant 0 : index
    %6 = vector.load %arg17[%c0_5, %c0_6] : memref<36x128xf32, #tpu.memory_space<vmem>>, vector<1x128xf32>
    tpu.vector_store %arg17[%c0_5, %c0_6], %5 {strides = array<i32>} : memref<36x128xf32, #tpu.memory_space<vmem>>, vector<1x128xf32>,
    %c17_7 = arith.constant 17 : index
    %c0_8 = arith.constant 0 : index
    %7 = vector.load %arg17[%c17_7, %c0_8] : memref<36x128xf32, #tpu.memory_space<vmem>>, vector<1x128xf32>
    tpu.vector_store %arg17[%c17_7, %c0_8], %5 {strides = array<i32>} : memref<36x128xf32, #tpu.memory_space<vmem>>, vector<1x128xf32>,
    %c18_9 = arith.constant 18 : index
    %c0_10 = arith.constant 0 : index
    %8 = vector.load %arg17[%c18_9, %c0_10] : memref<36x128xf32, #tpu.memory_space<vmem>>, vector<1x128xf32>
    tpu.vector_store %arg17[%c18_9, %c0_10], %5 {strides = array<i32>} : memref<36x128xf32, #tpu.memory_space<vmem>>, vector<1x128xf32>,
    %c35_11 = arith.constant 35 : index
    %c0_12 = arith.constant 0 : index
    %9 = vector.load %arg17[%c35_11, %c0_12] : memref<36x128xf32, #tpu.memory_space<vmem>>, vector<1x128xf32>
    tpu.vector_store %arg17[%c35_11, %c0_12], %5 {strides = array<i32>} : memref<36x128xf32, #tpu.memory_space<vmem>>, vector<1x128xf32>,
    %cst_13 = arith.constant 0.000000e+00 : f32
    %10 = vector.broadcast %cst_13 : f32 to vector<1x64xf32>
    %c0_14 = arith.constant 0 : index
    %c0_15 = arith.constant 0 : index
    %11 = vector.load %arg18[%c0_14, %c0_15] : memref<20x64xf32, #tpu.memory_space<vmem>>, vector<1x64xf32>
    tpu.vector_store %arg18[%c0_14, %c0_15], %10 {strides = array<i32>} : memref<20x64xf32, #tpu.memory_space<vmem>>, vector<1x64xf32>,
    %c9 = arith.constant 9 : index
    %c0_16 = arith.constant 0 : index
    %12 = vector.load %arg18[%c9, %c0_16] : memref<20x64xf32, #tpu.memory_space<vmem>>, vector<1x64xf32>
    tpu.vector_store %arg18[%c9, %c0_16], %10 {strides = array<i32>} : memref<20x64xf32, #tpu.memory_space<vmem>>, vector<1x64xf32>,
    %c10 = arith.constant 10 : index
    %c0_17 = arith.constant 0 : index
    %13 = vector.load %arg18[%c10, %c0_17] : memref<20x64xf32, #tpu.memory_space<vmem>>, vector<1x64xf32>
    tpu.vector_store %arg18[%c10, %c0_17], %10 {strides = array<i32>} : memref<20x64xf32, #tpu.memory_space<vmem>>, vector<1x64xf32>,
    %c19 = arith.constant 19 : index
    %c0_18 = arith.constant 0 : index
    %14 = vector.load %arg18[%c19, %c0_18] : memref<20x64xf32, #tpu.memory_space<vmem>>, vector<1x64xf32>
    tpu.vector_store %arg18[%c19, %c0_18], %10 {strides = array<i32>} : memref<20x64xf32, #tpu.memory_space<vmem>>, vector<1x64xf32>,
    %cst_19 = arith.constant 0.000000e+00 : f32
    %15 = vector.broadcast %cst_19 : f32 to vector<1x32xf32>
    %c0_20 = arith.constant 0 : index
    %c0_21 = arith.constant 0 : index
    %16 = vector.load %arg19[%c0_20, %c0_21] : memref<12x32xf32, #tpu.memory_space<vmem>>, vector<1x32xf32>
    tpu.vector_store %arg19[%c0_20, %c0_21], %15 {strides = array<i32>} : memref<12x32xf32, #tpu.memory_space<vmem>>, vector<1x32xf32>,
    %c5 = arith.constant 5 : index
    %c0_22 = arith.constant 0 : index
    %17 = vector.load %arg19[%c5, %c0_22] : memref<12x32xf32, #tpu.memory_space<vmem>>, vector<1x32xf32>
    tpu.vector_store %arg19[%c5, %c0_22], %15 {strides = array<i32>} : memref<12x32xf32, #tpu.memory_space<vmem>>, vector<1x32xf32>,
    %c6 = arith.constant 6 : index
    %c0_23 = arith.constant 0 : index
    %18 = vector.load %arg19[%c6, %c0_23] : memref<12x32xf32, #tpu.memory_space<vmem>>, vector<1x32xf32>
    tpu.vector_store %arg19[%c6, %c0_23], %15 {strides = array<i32>} : memref<12x32xf32, #tpu.memory_space<vmem>>, vector<1x32xf32>,
    %c11 = arith.constant 11 : index
    %c0_24 = arith.constant 0 : index
    %19 = vector.load %arg19[%c11, %c0_24] : memref<12x32xf32, #tpu.memory_space<vmem>>, vector<1x32xf32>
    tpu.vector_store %arg19[%c11, %c0_24], %15 {strides = array<i32>} : memref<12x32xf32, #tpu.memory_space<vmem>>, vector<1x32xf32>,
    %c0_25 = arith.constant 0 : index
    %c0_26 = arith.constant 0 : index
    %20 = vector.load %arg0[%c0_25, %c0_26] : memref<32x64xf32, #tpu.memory_space<vmem>>, vector<16x64xf32>
    %c1 = arith.constant 1 : index
    %c0_27 = arith.constant 0 : index
    %21 = vector.load %arg16[%c1, %c0_27] : memref<36x64xf32, #tpu.memory_space<vmem>>, vector<16x64xf32>
    tpu.vector_store %arg16[%c1, %c0_27], %20 {strides = array<i32>} : memref<36x64xf32, #tpu.memory_space<vmem>>, vector<16x64xf32>,
    %c16 = arith.constant 16 : index
    %c0_28 = arith.constant 0 : index
    %22 = vector.load %arg0[%c16, %c0_28] : memref<32x64xf32, #tpu.memory_space<vmem>>, vector<16x64xf32>
    %c19_29 = arith.constant 19 : index
    %c0_30 = arith.constant 0 : index
    %23 = vector.load %arg16[%c19_29, %c0_30] : memref<36x64xf32, #tpu.memory_space<vmem>>, vector<16x64xf32>
    tpu.vector_store %arg16[%c19_29, %c0_30], %22 {strides = array<i32>} : memref<36x64xf32, #tpu.memory_space<vmem>>, vector<16x64xf32>,
    %c0_31 = arith.constant 0 : index
    %c0_32 = arith.constant 0 : index
    %24 = vector.load %arg7[%c0_31, %c0_32] : memref<1x128xf32, #tpu.memory_space<vmem>>, vector<1x128xf32>
    %25 = vector.shape_cast %24 : vector<1x128xf32> to vector<1x128xf32>
    %26 = vector.broadcast %25 : vector<1x128xf32> to vector<34x128xf32>
    %c0_33 = arith.constant 0 : index
    %c0_34 = arith.constant 0 : index
    %27 = vector.load %arg16[%c0_33, %c0_34] : memref<36x64xf32, #tpu.memory_space<vmem>>, vector<34x64xf32>
    %c0_35 = arith.constant 0 : index
    %c0_36 = arith.constant 0 : index
    %c0_37 = arith.constant 0 : index
    %28 = vector.load %arg1[%c0_35, %c0_36, %c0_37] : memref<3x64x128xf32, #tpu.memory_space<vmem>>, vector<1x64x128xf32>
    %29 = vector.shape_cast %28 : vector<1x64x128xf32> to vector<64x128xf32>
    %cst_38 = arith.constant dense<0.000000e+00> : vector<34x128xf32>
    %30 = tpu.matmul %27, %29, %cst_38 {dimension_numbers = #tpu.dot_dimension_numbers<[1], [0], [0], [1], [0, 0, 1, 1], [], []>} : vector<34x64xf32>, vector<64x128xf32>, vector<34x128xf32> -> vector<34x128xf32>
    %31 = arith.addf %26, %30 : vector<34x128xf32>
    %c1_39 = arith.constant 1 : index
    %c0_40 = arith.constant 0 : index
    %32 = vector.load %arg16[%c1_39, %c0_40] : memref<36x64xf32, #tpu.memory_space<vmem>>, vector<34x64xf32>
    %c1_41 = arith.constant 1 : index
    %c0_42 = arith.constant 0 : index
    %c0_43 = arith.constant 0 : index
    %33 = vector.load %arg1[%c1_41, %c0_42, %c0_43] : memref<3x64x128xf32, #tpu.memory_space<vmem>>, vector<1x64x128xf32>
    %34 = vector.shape_cast %33 : vector<1x64x128xf32> to vector<64x128xf32>
    %cst_44 = arith.constant dense<0.000000e+00> : vector<34x128xf32>
    %35 = tpu.matmul %32, %34, %cst_44 {dimension_numbers = #tpu.dot_dimension_numbers<[1], [0], [0], [1], [0, 0, 1, 1], [], []>} : vector<34x64xf32>, vector<64x128xf32>, vector<34x128xf32> -> vector<34x128xf32>
    %36 = arith.addf %31, %35 : vector<34x128xf32>
    %c2 = arith.constant 2 : index
    %c0_45 = arith.constant 0 : index
    %37 = vector.load %arg16[%c2, %c0_45] : memref<36x64xf32, #tpu.memory_space<vmem>>, vector<34x64xf32>
    %c2_46 = arith.constant 2 : index
    %c0_47 = arith.constant 0 : index
    %c0_48 = arith.constant 0 : index
    %38 = vector.load %arg1[%c2_46, %c0_47, %c0_48] : memref<3x64x128xf32, #tpu.memory_space<vmem>>, vector<1x64x128xf32>
    %39 = vector.shape_cast %38 : vector<1x64x128xf32> to vector<64x128xf32>
    %cst_49 = arith.constant dense<0.000000e+00> : vector<34x128xf32>
    %40 = tpu.matmul %37, %39, %cst_49 {dimension_numbers = #tpu.dot_dimension_numbers<[1], [0], [0], [1], [0, 0, 1, 1], [], []>} : vector<34x64xf32>, vector<64x128xf32>, vector<34x128xf32> -> vector<34x128xf32>
    %41 = arith.addf %36, %40 : vector<34x128xf32>
    %c0_50 = arith.constant 0 : index
    %c0_51 = arith.constant 0 : index
    %42 = vector.load %arg20[%c0_50, %c0_51] : memref<34x128xf32, #tpu.memory_space<vmem>>, vector<34x128xf32>
    tpu.vector_store %arg20[%c0_50, %c0_51], %41 {strides = array<i32>} : memref<34x128xf32, #tpu.memory_space<vmem>>, vector<34x128xf32>,
    %c0_52 = arith.constant 0 : index
    %c0_53 = arith.constant 0 : index
    %43 = vector.load %arg20[%c0_52, %c0_53] : memref<34x128xf32, #tpu.memory_space<vmem>>, vector<16x128xf32>
    %cst_54 = arith.constant 0.000000e+00 : f32
    %44 = vector.broadcast %cst_54 : f32 to vector<16x128xf32>
    %45 = arith.maximumf %43, %44 : vector<16x128xf32>
    %c1_55 = arith.constant 1 : index
    %c0_56 = arith.constant 0 : index
    %46 = vector.load %arg17[%c1_55, %c0_56] : memref<36x128xf32, #tpu.memory_space<vmem>>, vector<16x128xf32>
    tpu.vector_store %arg17[%c1_55, %c0_56], %45 {strides = array<i32>} : memref<36x128xf32, #tpu.memory_space<vmem>>, vector<16x128xf32>,
    %c18_57 = arith.constant 18 : index
    %c0_58 = arith.constant 0 : index
    %47 = vector.load %arg20[%c18_57, %c0_58] : memref<34x128xf32, #tpu.memory_space<vmem>>, vector<16x128xf32>
    %cst_59 = arith.constant 0.000000e+00 : f32
    %48 = vector.broadcast %cst_59 : f32 to vector<16x128xf32>
    %49 = arith.maximumf %47, %48 : vector<16x128xf32>
    %c19_60 = arith.constant 19 : index
    %c0_61 = arith.constant 0 : index
    %50 = vector.load %arg17[%c19_60, %c0_61] : memref<36x128xf32, #tpu.memory_space<vmem>>, vector<16x128xf32>
    tpu.vector_store %arg17[%c19_60, %c0_61], %49 {strides = array<i32>} : memref<36x128xf32, #tpu.memory_space<vmem>>, vector<16x128xf32>,
    %c0_62 = arith.constant 0 : index
    %c0_63 = arith.constant 0 : index
    %51 = vector.load %arg8[%c0_62, %c0_63] : memref<1x128xf32, #tpu.memory_space<vmem>>, vector<1x128xf32>
    %52 = vector.shape_cast %51 : vector<1x128xf32> to vector<1x128xf32>
    %53 = vector.broadcast %52 : vector<1x128xf32> to vector<34x128xf32>
    %c0_64 = arith.constant 0 : index
    %c0_65 = arith.constant 0 : index
    %54 = vector.load %arg17[%c0_64, %c0_65] : memref<36x128xf32, #tpu.memory_space<vmem>>, vector<34x128xf32>
    %c0_66 = arith.constant 0 : index
    %c0_67 = arith.constant 0 : index
    %c0_68 = arith.constant 0 : index
    %55 = vector.load %arg2[%c0_66, %c0_67, %c0_68] : memref<3x128x128xf32, #tpu.memory_space<vmem>>, vector<1x128x128xf32>
    %56 = vector.shape_cast %55 : vector<1x128x128xf32> to vector<128x128xf32>
    %cst_69 = arith.constant dense<0.000000e+00> : vector<34x128xf32>
    %57 = tpu.matmul %54, %56, %cst_69 {dimension_numbers = #tpu.dot_dimension_numbers<[1], [0], [0], [1], [0, 0, 1, 1], [], []>} : vector<34x128xf32>, vector<128x128xf32>, vector<34x128xf32> -> vector<34x128xf32>
    %58 = arith.addf %53, %57 : vector<34x128xf32>
    %c1_70 = arith.constant 1 : index
    %c0_71 = arith.constant 0 : index
    %59 = vector.load %arg17[%c1_70, %c0_71] : memref<36x128xf32, #tpu.memory_space<vmem>>, vector<34x128xf32>
    %c1_72 = arith.constant 1 : index
    %c0_73 = arith.constant 0 : index
    %c0_74 = arith.constant 0 : index
    %60 = vector.load %arg2[%c1_72, %c0_73, %c0_74] : memref<3x128x128xf32, #tpu.memory_space<vmem>>, vector<1x128x128xf32>
    %61 = vector.shape_cast %60 : vector<1x128x128xf32> to vector<128x128xf32>
    %cst_75 = arith.constant dense<0.000000e+00> : vector<34x128xf32>
    %62 = tpu.matmul %59, %61, %cst_75 {dimension_numbers = #tpu.dot_dimension_numbers<[1], [0], [0], [1], [0, 0, 1, 1], [], []>} : vector<34x128xf32>, vector<128x128xf32>, vector<34x128xf32> -> vector<34x128xf32>
    %63 = arith.addf %58, %62 : vector<34x128xf32>
    %c2_76 = arith.constant 2 : index
    %c0_77 = arith.constant 0 : index
    %64 = vector.load %arg17[%c2_76, %c0_77] : memref<36x128xf32, #tpu.memory_space<vmem>>, vector<34x128xf32>
    %c2_78 = arith.constant 2 : index
    %c0_79 = arith.constant 0 : index
    %c0_80 = arith.constant 0 : index
    %65 = vector.load %arg2[%c2_78, %c0_79, %c0_80] : memref<3x128x128xf32, #tpu.memory_space<vmem>>, vector<1x128x128xf32>
    %66 = vector.shape_cast %65 : vector<1x128x128xf32> to vector<128x128xf32>
    %cst_81 = arith.constant dense<0.000000e+00> : vector<34x128xf32>
    %67 = tpu.matmul %64, %66, %cst_81 {dimension_numbers = #tpu.dot_dimension_numbers<[1], [0], [0], [1], [0, 0, 1, 1], [], []>} : vector<34x128xf32>, vector<128x128xf32>, vector<34x128xf32> -> vector<34x128xf32>
    %68 = arith.addf %63, %67 : vector<34x128xf32>
    %c0_82 = arith.constant 0 : index
    %c0_83 = arith.constant 0 : index
    %69 = vector.load %arg20[%c0_82, %c0_83] : memref<34x128xf32, #tpu.memory_space<vmem>>, vector<34x128xf32>
    tpu.vector_store %arg20[%c0_82, %c0_83], %68 {strides = array<i32>} : memref<34x128xf32, #tpu.memory_space<vmem>>, vector<34x128xf32>,
    %c0_84 = arith.constant 0 : index
    %c0_85 = arith.constant 0 : index
    %70 = vector.load %arg20[%c0_84, %c0_85] : memref<34x128xf32, #tpu.memory_space<vmem>>, vector<16x128xf32>
    %c0_86 = arith.constant 0 : index
    %c0_87 = arith.constant 0 : index
    %71 = vector.load %arg13[%c0_86, %c0_87] : memref<32x128xf32, #tpu.memory_space<vmem>>, vector<16x128xf32>
    tpu.vector_store %arg13[%c0_86, %c0_87], %70 {strides = array<i32>} : memref<32x128xf32, #tpu.memory_space<vmem>>, vector<16x128xf32>,
    %cst_88 = arith.constant 0.000000e+00 : f32
    %72 = vector.broadcast %cst_88 : f32 to vector<16x128xf32>
    %73 = arith.maximumf %70, %72 : vector<16x128xf32>
    %c1_89 = arith.constant 1 : index
    %c0_90 = arith.constant 0 : index
    %74 = vector.load %arg17[%c1_89, %c0_90] : memref<36x128xf32, #tpu.memory_space<vmem>>, vector<16x128xf32>
    tpu.vector_store %arg17[%c1_89, %c0_90], %73 {strides = array<i32>} : memref<36x128xf32, #tpu.memory_space<vmem>>, vector<16x128xf32>,
    %c18_91 = arith.constant 18 : index
    %c0_92 = arith.constant 0 : index
    %75 = vector.load %arg20[%c18_91, %c0_92] : memref<34x128xf32, #tpu.memory_space<vmem>>, vector<16x128xf32>
    %c16_93 = arith.constant 16 : index
    %c0_94 = arith.constant 0 : index
    %76 = vector.load %arg13[%c16_93, %c0_94] : memref<32x128xf32, #tpu.memory_space<vmem>>, vector<16x128xf32>
    tpu.vector_store %arg13[%c16_93, %c0_94], %75 {strides = array<i32>} : memref<32x128xf32, #tpu.memory_space<vmem>>, vector<16x128xf32>,
    %cst_95 = arith.constant 0.000000e+00 : f32
    %77 = vector.broadcast %cst_95 : f32 to vector<16x128xf32>
    %78 = arith.maximumf %75, %77 : vector<16x128xf32>
    %c19_96 = arith.constant 19 : index
    %c0_97 = arith.constant 0 : index
    %79 = vector.load %arg17[%c19_96, %c0_97] : memref<36x128xf32, #tpu.memory_space<vmem>>, vector<16x128xf32>
    tpu.vector_store %arg17[%c19_96, %c0_97], %78 {strides = array<i32>} : memref<36x128xf32, #tpu.memory_space<vmem>>, vector<16x128xf32>,
    %c0_98 = arith.constant 0 : index
    %c0_99 = arith.constant 0 : index
    %80 = vector.load %arg9[%c0_98, %c0_99] : memref<1x64xf32, #tpu.memory_space<vmem>>, vector<1x64xf32>
    %81 = vector.shape_cast %80 : vector<1x64xf32> to vector<1x64xf32>
    %82 = vector.broadcast %81 : vector<1x64xf32> to vector<17x64xf32>
    %c0_100 = arith.constant 0 : index
    %c0_101 = arith.constant 0 : index
    %83 = tpu.strided_load %arg17[%c0_100, %c0_101] {strides = array<i32: 2, 1>} : memref<36x128xf32, #tpu.memory_space<vmem>>, vector<17x128xf32>
    %c0_102 = arith.constant 0 : index
    %c0_103 = arith.constant 0 : index
    %c0_104 = arith.constant 0 : index
    %84 = vector.load %arg3[%c0_102, %c0_103, %c0_104] : memref<3x128x64xf32, #tpu.memory_space<vmem>>, vector<1x128x64xf32>
    %85 = vector.shape_cast %84 : vector<1x128x64xf32> to vector<128x64xf32>
    %cst_105 = arith.constant dense<0.000000e+00> : vector<17x64xf32>
    %86 = tpu.matmul %83, %85, %cst_105 {dimension_numbers = #tpu.dot_dimension_numbers<[1], [0], [0], [1], [0, 0, 1, 1], [], []>} : vector<17x128xf32>, vector<128x64xf32>, vector<17x64xf32> -> vector<17x64xf32>
    %87 = arith.addf %82, %86 : vector<17x64xf32>
    %c1_106 = arith.constant 1 : index
    %c0_107 = arith.constant 0 : index
    %88 = tpu.strided_load %arg17[%c1_106, %c0_107] {strides = array<i32: 2, 1>} : memref<36x128xf32, #tpu.memory_space<vmem>>, vector<17x128xf32>
    %c1_108 = arith.constant 1 : index
    %c0_109 = arith.constant 0 : index
    %c0_110 = arith.constant 0 : index
    %89 = vector.load %arg3[%c1_108, %c0_109, %c0_110] : memref<3x128x64xf32, #tpu.memory_space<vmem>>, vector<1x128x64xf32>
    %90 = vector.shape_cast %89 : vector<1x128x64xf32> to vector<128x64xf32>
    %cst_111 = arith.constant dense<0.000000e+00> : vector<17x64xf32>
    %91 = tpu.matmul %88, %90, %cst_111 {dimension_numbers = #tpu.dot_dimension_numbers<[1], [0], [0], [1], [0, 0, 1, 1], [], []>} : vector<17x128xf32>, vector<128x64xf32>, vector<17x64xf32> -> vector<17x64xf32>
    %92 = arith.addf %87, %91 : vector<17x64xf32>
    %c2_112 = arith.constant 2 : index
    %c0_113 = arith.constant 0 : index
    %93 = tpu.strided_load %arg17[%c2_112, %c0_113] {strides = array<i32: 2, 1>} : memref<36x128xf32, #tpu.memory_space<vmem>>, vector<17x128xf32>
    %c2_114 = arith.constant 2 : index
    %c0_115 = arith.constant 0 : index
    %c0_116 = arith.constant 0 : index
    %94 = vector.load %arg3[%c2_114, %c0_115, %c0_116] : memref<3x128x64xf32, #tpu.memory_space<vmem>>, vector<1x128x64xf32>
    %95 = vector.shape_cast %94 : vector<1x128x64xf32> to vector<128x64xf32>
    %cst_117 = arith.constant dense<0.000000e+00> : vector<17x64xf32>
    %96 = tpu.matmul %93, %95, %cst_117 {dimension_numbers = #tpu.dot_dimension_numbers<[1], [0], [0], [1], [0, 0, 1, 1], [], []>} : vector<17x128xf32>, vector<128x64xf32>, vector<17x64xf32> -> vector<17x64xf32>
    %97 = arith.addf %92, %96 : vector<17x64xf32>
    %c0_118 = arith.constant 0 : index
    %c0_119 = arith.constant 0 : index
    %98 = vector.load %arg21[%c0_118, %c0_119] : memref<18x64xf32, #tpu.memory_space<vmem>>, vector<17x64xf32>
    tpu.vector_store %arg21[%c0_118, %c0_119], %97 {strides = array<i32>} : memref<18x64xf32, #tpu.memory_space<vmem>>, vector<17x64xf32>,
    %c0_120 = arith.constant 0 : index
    %c0_121 = arith.constant 0 : index
    %99 = vector.load %arg21[%c0_120, %c0_121] : memref<18x64xf32, #tpu.memory_space<vmem>>, vector<8x64xf32>
    %cst_122 = arith.constant 0.000000e+00 : f32
    %100 = vector.broadcast %cst_122 : f32 to vector<8x64xf32>
    %101 = arith.maximumf %99, %100 : vector<8x64xf32>
    %c1_123 = arith.constant 1 : index
    %c0_124 = arith.constant 0 : index
    %102 = vector.load %arg18[%c1_123, %c0_124] : memref<20x64xf32, #tpu.memory_space<vmem>>, vector<8x64xf32>
    tpu.vector_store %arg18[%c1_123, %c0_124], %101 {strides = array<i32>} : memref<20x64xf32, #tpu.memory_space<vmem>>, vector<8x64xf32>,
    %c9_125 = arith.constant 9 : index
    %c0_126 = arith.constant 0 : index
    %103 = vector.load %arg21[%c9_125, %c0_126] : memref<18x64xf32, #tpu.memory_space<vmem>>, vector<8x64xf32>
    %cst_127 = arith.constant 0.000000e+00 : f32
    %104 = vector.broadcast %cst_127 : f32 to vector<8x64xf32>
    %105 = arith.maximumf %103, %104 : vector<8x64xf32>
    %c11_128 = arith.constant 11 : index
    %c0_129 = arith.constant 0 : index
    %106 = vector.load %arg18[%c11_128, %c0_129] : memref<20x64xf32, #tpu.memory_space<vmem>>, vector<8x64xf32>
    tpu.vector_store %arg18[%c11_128, %c0_129], %105 {strides = array<i32>} : memref<20x64xf32, #tpu.memory_space<vmem>>, vector<8x64xf32>,
    %c0_130 = arith.constant 0 : index
    %c0_131 = arith.constant 0 : index
    %107 = vector.load %arg10[%c0_130, %c0_131] : memref<1x64xf32, #tpu.memory_space<vmem>>, vector<1x64xf32>
    %108 = vector.shape_cast %107 : vector<1x64xf32> to vector<1x64xf32>
    %109 = vector.broadcast %108 : vector<1x64xf32> to vector<18x64xf32>
    %c0_132 = arith.constant 0 : index
    %c0_133 = arith.constant 0 : index
    %110 = vector.load %arg18[%c0_132, %c0_133] : memref<20x64xf32, #tpu.memory_space<vmem>>, vector<18x64xf32>
    %c0_134 = arith.constant 0 : index
    %c0_135 = arith.constant 0 : index
    %c0_136 = arith.constant 0 : index
    %111 = vector.load %arg4[%c0_134, %c0_135, %c0_136] : memref<3x64x64xf32, #tpu.memory_space<vmem>>, vector<1x64x64xf32>
    %112 = vector.shape_cast %111 : vector<1x64x64xf32> to vector<64x64xf32>
    %cst_137 = arith.constant dense<0.000000e+00> : vector<18x64xf32>
    %113 = tpu.matmul %110, %112, %cst_137 {dimension_numbers = #tpu.dot_dimension_numbers<[1], [0], [0], [1], [0, 0, 1, 1], [], []>} : vector<18x64xf32>, vector<64x64xf32>, vector<18x64xf32> -> vector<18x64xf32>
    %114 = arith.addf %109, %113 : vector<18x64xf32>
    %c1_138 = arith.constant 1 : index
    %c0_139 = arith.constant 0 : index
    %115 = vector.load %arg18[%c1_138, %c0_139] : memref<20x64xf32, #tpu.memory_space<vmem>>, vector<18x64xf32>
    %c1_140 = arith.constant 1 : index
    %c0_141 = arith.constant 0 : index
    %c0_142 = arith.constant 0 : index
    %116 = vector.load %arg4[%c1_140, %c0_141, %c0_142] : memref<3x64x64xf32, #tpu.memory_space<vmem>>, vector<1x64x64xf32>
    %117 = vector.shape_cast %116 : vector<1x64x64xf32> to vector<64x64xf32>
    %cst_143 = arith.constant dense<0.000000e+00> : vector<18x64xf32>
    %118 = tpu.matmul %115, %117, %cst_143 {dimension_numbers = #tpu.dot_dimension_numbers<[1], [0], [0], [1], [0, 0, 1, 1], [], []>} : vector<18x64xf32>, vector<64x64xf32>, vector<18x64xf32> -> vector<18x64xf32>
    %119 = arith.addf %114, %118 : vector<18x64xf32>
    %c2_144 = arith.constant 2 : index
    %c0_145 = arith.constant 0 : index
    %120 = vector.load %arg18[%c2_144, %c0_145] : memref<20x64xf32, #tpu.memory_space<vmem>>, vector<18x64xf32>
    %c2_146 = arith.constant 2 : index
    %c0_147 = arith.constant 0 : index
    %c0_148 = arith.constant 0 : index
    %121 = vector.load %arg4[%c2_146, %c0_147, %c0_148] : memref<3x64x64xf32, #tpu.memory_space<vmem>>, vector<1x64x64xf32>
    %122 = vector.shape_cast %121 : vector<1x64x64xf32> to vector<64x64xf32>
    %cst_149 = arith.constant dense<0.000000e+00> : vector<18x64xf32>
    %123 = tpu.matmul %120, %122, %cst_149 {dimension_numbers = #tpu.dot_dimension_numbers<[1], [0], [0], [1], [0, 0, 1, 1], [], []>} : vector<18x64xf32>, vector<64x64xf32>, vector<18x64xf32> -> vector<18x64xf32>
    %124 = arith.addf %119, %123 : vector<18x64xf32>
    %c0_150 = arith.constant 0 : index
    %c0_151 = arith.constant 0 : index
    %125 = vector.load %arg21[%c0_150, %c0_151] : memref<18x64xf32, #tpu.memory_space<vmem>>, vector<18x64xf32>
    tpu.vector_store %arg21[%c0_150, %c0_151], %124 {strides = array<i32>} : memref<18x64xf32, #tpu.memory_space<vmem>>, vector<18x64xf32>,
    %c0_152 = arith.constant 0 : index
    %c0_153 = arith.constant 0 : index
    %126 = vector.load %arg21[%c0_152, %c0_153] : memref<18x64xf32, #tpu.memory_space<vmem>>, vector<8x64xf32>
    %cst_154 = arith.constant 0.000000e+00 : f32
    %127 = vector.broadcast %cst_154 : f32 to vector<8x64xf32>
    %128 = arith.maximumf %126, %127 : vector<8x64xf32>
    %c1_155 = arith.constant 1 : index
    %c0_156 = arith.constant 0 : index
    %129 = vector.load %arg18[%c1_155, %c0_156] : memref<20x64xf32, #tpu.memory_space<vmem>>, vector<8x64xf32>
    tpu.vector_store %arg18[%c1_155, %c0_156], %128 {strides = array<i32>} : memref<20x64xf32, #tpu.memory_space<vmem>>, vector<8x64xf32>,
    %c10_157 = arith.constant 10 : index
    %c0_158 = arith.constant 0 : index
    %130 = vector.load %arg21[%c10_157, %c0_158] : memref<18x64xf32, #tpu.memory_space<vmem>>, vector<8x64xf32>
    %cst_159 = arith.constant 0.000000e+00 : f32
    %131 = vector.broadcast %cst_159 : f32 to vector<8x64xf32>
    %132 = arith.maximumf %130, %131 : vector<8x64xf32>
    %c11_160 = arith.constant 11 : index
    %c0_161 = arith.constant 0 : index
    %133 = vector.load %arg18[%c11_160, %c0_161] : memref<20x64xf32, #tpu.memory_space<vmem>>, vector<8x64xf32>
    tpu.vector_store %arg18[%c11_160, %c0_161], %132 {strides = array<i32>} : memref<20x64xf32, #tpu.memory_space<vmem>>, vector<8x64xf32>,
    %c0_162 = arith.constant 0 : index
    %c0_163 = arith.constant 0 : index
    %134 = tpu.strided_load %arg21[%c0_162, %c0_163] {strides = array<i32: 2, 1>} : memref<18x64xf32, #tpu.memory_space<vmem>>, vector<4x64xf32>
    %c0_164 = arith.constant 0 : index
    %c0_165 = arith.constant 0 : index
    %135 = vector.load %arg14[%c0_164, %c0_165] : memref<8x128xf32, #tpu.memory_space<vmem>>, vector<4x64xf32>
    tpu.vector_store %arg14[%c0_164, %c0_165], %134 {strides = array<i32>} : memref<8x128xf32, #tpu.memory_space<vmem>>, vector<4x64xf32>,
    %c1_166 = arith.constant 1 : index
    %c0_167 = arith.constant 0 : index
    %136 = tpu.strided_load %arg21[%c1_166, %c0_167] {strides = array<i32: 2, 1>} : memref<18x64xf32, #tpu.memory_space<vmem>>, vector<4x64xf32>
    %c0_168 = arith.constant 0 : index
    %c64 = arith.constant 64 : index
    %137 = vector.load %arg14[%c0_168, %c64] : memref<8x128xf32, #tpu.memory_space<vmem>>, vector<4x64xf32>
    tpu.vector_store %arg14[%c0_168, %c64], %136 {strides = array<i32>} : memref<8x128xf32, #tpu.memory_space<vmem>>, vector<4x64xf32>,
    %c10_169 = arith.constant 10 : index
    %c0_170 = arith.constant 0 : index
    %138 = tpu.strided_load %arg21[%c10_169, %c0_170] {strides = array<i32: 2, 1>} : memref<18x64xf32, #tpu.memory_space<vmem>>, vector<4x64xf32>
    %c4 = arith.constant 4 : index
    %c0_171 = arith.constant 0 : index
    %139 = vector.load %arg14[%c4, %c0_171] : memref<8x128xf32, #tpu.memory_space<vmem>>, vector<4x64xf32>
    tpu.vector_store %arg14[%c4, %c0_171], %138 {strides = array<i32>} : memref<8x128xf32, #tpu.memory_space<vmem>>, vector<4x64xf32>,
    %c11_172 = arith.constant 11 : index
    %c0_173 = arith.constant 0 : index
    %140 = tpu.strided_load %arg21[%c11_172, %c0_173] {strides = array<i32: 2, 1>} : memref<18x64xf32, #tpu.memory_space<vmem>>, vector<4x64xf32>
    %c4_174 = arith.constant 4 : index
    %c64_175 = arith.constant 64 : index
    %141 = vector.load %arg14[%c4_174, %c64_175] : memref<8x128xf32, #tpu.memory_space<vmem>>, vector<4x64xf32>
    tpu.vector_store %arg14[%c4_174, %c64_175], %140 {strides = array<i32>} : memref<8x128xf32, #tpu.memory_space<vmem>>, vector<4x64xf32>,
    %c0_176 = arith.constant 0 : index
    %c0_177 = arith.constant 0 : index
    %142 = vector.load %arg11[%c0_176, %c0_177] : memref<1x32xf32, #tpu.memory_space<vmem>>, vector<1x32xf32>
    %143 = vector.shape_cast %142 : vector<1x32xf32> to vector<1x32xf32>
    %144 = vector.broadcast %143 : vector<1x32xf32> to vector<9x32xf32>
    %c0_178 = arith.constant 0 : index
    %c0_179 = arith.constant 0 : index
    %145 = tpu.strided_load %arg18[%c0_178, %c0_179] {strides = array<i32: 2, 1>} : memref<20x64xf32, #tpu.memory_space<vmem>>, vector<9x64xf32>
    %c0_180 = arith.constant 0 : index
    %c0_181 = arith.constant 0 : index
    %c0_182 = arith.constant 0 : index
    %146 = vector.load %arg5[%c0_180, %c0_181, %c0_182] : memref<3x64x32xf32, #tpu.memory_space<vmem>>, vector<1x64x32xf32>
    %147 = vector.shape_cast %146 : vector<1x64x32xf32> to vector<64x32xf32>
    %cst_183 = arith.constant dense<0.000000e+00> : vector<9x32xf32>
    %148 = tpu.matmul %145, %147, %cst_183 {dimension_numbers = #tpu.dot_dimension_numbers<[1], [0], [0], [1], [0, 0, 1, 1], [], []>} : vector<9x64xf32>, vector<64x32xf32>, vector<9x32xf32> -> vector<9x32xf32>
    %149 = arith.addf %144, %148 : vector<9x32xf32>
    %c1_184 = arith.constant 1 : index
    %c0_185 = arith.constant 0 : index
    %150 = tpu.strided_load %arg18[%c1_184, %c0_185] {strides = array<i32: 2, 1>} : memref<20x64xf32, #tpu.memory_space<vmem>>, vector<9x64xf32>
    %c1_186 = arith.constant 1 : index
    %c0_187 = arith.constant 0 : index
    %c0_188 = arith.constant 0 : index
    %151 = vector.load %arg5[%c1_186, %c0_187, %c0_188] : memref<3x64x32xf32, #tpu.memory_space<vmem>>, vector<1x64x32xf32>
    %152 = vector.shape_cast %151 : vector<1x64x32xf32> to vector<64x32xf32>
    %cst_189 = arith.constant dense<0.000000e+00> : vector<9x32xf32>
    %153 = tpu.matmul %150, %152, %cst_189 {dimension_numbers = #tpu.dot_dimension_numbers<[1], [0], [0], [1], [0, 0, 1, 1], [], []>} : vector<9x64xf32>, vector<64x32xf32>, vector<9x32xf32> -> vector<9x32xf32>
    %154 = arith.addf %149, %153 : vector<9x32xf32>
    %c2_190 = arith.constant 2 : index
    %c0_191 = arith.constant 0 : index
    %155 = tpu.strided_load %arg18[%c2_190, %c0_191] {strides = array<i32: 2, 1>} : memref<20x64xf32, #tpu.memory_space<vmem>>, vector<9x64xf32>
    %c2_192 = arith.constant 2 : index
    %c0_193 = arith.constant 0 : index
    %c0_194 = arith.constant 0 : index
    %156 = vector.load %arg5[%c2_192, %c0_193, %c0_194] : memref<3x64x32xf32, #tpu.memory_space<vmem>>, vector<1x64x32xf32>
    %157 = vector.shape_cast %156 : vector<1x64x32xf32> to vector<64x32xf32>
    %cst_195 = arith.constant dense<0.000000e+00> : vector<9x32xf32>
    %158 = tpu.matmul %155, %157, %cst_195 {dimension_numbers = #tpu.dot_dimension_numbers<[1], [0], [0], [1], [0, 0, 1, 1], [], []>} : vector<9x64xf32>, vector<64x32xf32>, vector<9x32xf32> -> vector<9x32xf32>
    %159 = arith.addf %154, %158 : vector<9x32xf32>
    %c0_196 = arith.constant 0 : index
    %c0_197 = arith.constant 0 : index
    %160 = vector.load %arg22[%c0_196, %c0_197] : memref<10x32xf32, #tpu.memory_space<vmem>>, vector<9x32xf32>
    tpu.vector_store %arg22[%c0_196, %c0_197], %159 {strides = array<i32>} : memref<10x32xf32, #tpu.memory_space<vmem>>, vector<9x32xf32>,
    %c0_198 = arith.constant 0 : index
    %c0_199 = arith.constant 0 : index
    %161 = vector.load %arg22[%c0_198, %c0_199] : memref<10x32xf32, #tpu.memory_space<vmem>>, vector<4x32xf32>
    %cst_200 = arith.constant 0.000000e+00 : f32
    %162 = vector.broadcast %cst_200 : f32 to vector<4x32xf32>
    %163 = arith.maximumf %161, %162 : vector<4x32xf32>
    %c1_201 = arith.constant 1 : index
    %c0_202 = arith.constant 0 : index
    %164 = vector.load %arg19[%c1_201, %c0_202] : memref<12x32xf32, #tpu.memory_space<vmem>>, vector<4x32xf32>
    tpu.vector_store %arg19[%c1_201, %c0_202], %163 {strides = array<i32>} : memref<12x32xf32, #tpu.memory_space<vmem>>, vector<4x32xf32>,
    %c5_203 = arith.constant 5 : index
    %c0_204 = arith.constant 0 : index
    %165 = vector.load %arg22[%c5_203, %c0_204] : memref<10x32xf32, #tpu.memory_space<vmem>>, vector<4x32xf32>
    %cst_205 = arith.constant 0.000000e+00 : f32
    %166 = vector.broadcast %cst_205 : f32 to vector<4x32xf32>
    %167 = arith.maximumf %165, %166 : vector<4x32xf32>
    %c7 = arith.constant 7 : index
    %c0_206 = arith.constant 0 : index
    %168 = vector.load %arg19[%c7, %c0_206] : memref<12x32xf32, #tpu.memory_space<vmem>>, vector<4x32xf32>
    tpu.vector_store %arg19[%c7, %c0_206], %167 {strides = array<i32>} : memref<12x32xf32, #tpu.memory_space<vmem>>, vector<4x32xf32>,
    %c0_207 = arith.constant 0 : index
    %c0_208 = arith.constant 0 : index
    %169 = vector.load %arg12[%c0_207, %c0_208] : memref<1x32xf32, #tpu.memory_space<vmem>>, vector<1x32xf32>
    %170 = vector.shape_cast %169 : vector<1x32xf32> to vector<1x32xf32>
    %171 = vector.broadcast %170 : vector<1x32xf32> to vector<10x32xf32>
    %c0_209 = arith.constant 0 : index
    %c0_210 = arith.constant 0 : index
    %172 = vector.load %arg19[%c0_209, %c0_210] : memref<12x32xf32, #tpu.memory_space<vmem>>, vector<10x32xf32>
    %c0_211 = arith.constant 0 : index
    %c0_212 = arith.constant 0 : index
    %c0_213 = arith.constant 0 : index
    %173 = vector.load %arg6[%c0_211, %c0_212, %c0_213] : memref<3x32x32xf32, #tpu.memory_space<vmem>>, vector<1x32x32xf32>
    %174 = vector.shape_cast %173 : vector<1x32x32xf32> to vector<32x32xf32>
    %cst_214 = arith.constant dense<0.000000e+00> : vector<10x32xf32>
    %175 = tpu.matmul %172, %174, %cst_214 {dimension_numbers = #tpu.dot_dimension_numbers<[1], [0], [0], [1], [0, 0, 1, 1], [], []>} : vector<10x32xf32>, vector<32x32xf32>, vector<10x32xf32> -> vector<10x32xf32>
    %176 = arith.addf %171, %175 : vector<10x32xf32>
    %c1_215 = arith.constant 1 : index
    %c0_216 = arith.constant 0 : index
    %177 = vector.load %arg19[%c1_215, %c0_216] : memref<12x32xf32, #tpu.memory_space<vmem>>, vector<10x32xf32>
    %c1_217 = arith.constant 1 : index
    %c0_218 = arith.constant 0 : index
    %c0_219 = arith.constant 0 : index
    %178 = vector.load %arg6[%c1_217, %c0_218, %c0_219] : memref<3x32x32xf32, #tpu.memory_space<vmem>>, vector<1x32x32xf32>
    %179 = vector.shape_cast %178 : vector<1x32x32xf32> to vector<32x32xf32>
    %cst_220 = arith.constant dense<0.000000e+00> : vector<10x32xf32>
    %180 = tpu.matmul %177, %179, %cst_220 {dimension_numbers = #tpu.dot_dimension_numbers<[1], [0], [0], [1], [0, 0, 1, 1], [], []>} : vector<10x32xf32>, vector<32x32xf32>, vector<10x32xf32> -> vector<10x32xf32>
    %181 = arith.addf %176, %180 : vector<10x32xf32>
    %c2_221 = arith.constant 2 : index
    %c0_222 = arith.constant 0 : index
    %182 = vector.load %arg19[%c2_221, %c0_222] : memref<12x32xf32, #tpu.memory_space<vmem>>, vector<10x32xf32>
    %c2_223 = arith.constant 2 : index
    %c0_224 = arith.constant 0 : index
    %c0_225 = arith.constant 0 : index
    %183 = vector.load %arg6[%c2_223, %c0_224, %c0_225] : memref<3x32x32xf32, #tpu.memory_space<vmem>>, vector<1x32x32xf32>
    %184 = vector.shape_cast %183 : vector<1x32x32xf32> to vector<32x32xf32>
    %cst_226 = arith.constant dense<0.000000e+00> : vector<10x32xf32>
    %185 = tpu.matmul %182, %184, %cst_226 {dimension_numbers = #tpu.dot_dimension_numbers<[1], [0], [0], [1], [0, 0, 1, 1], [], []>} : vector<10x32xf32>, vector<32x32xf32>, vector<10x32xf32> -> vector<10x32xf32>
    %186 = arith.addf %181, %185 : vector<10x32xf32>
    %c0_227 = arith.constant 0 : index
    %c0_228 = arith.constant 0 : index
    %187 = vector.load %arg22[%c0_227, %c0_228] : memref<10x32xf32, #tpu.memory_space<vmem>>, vector<10x32xf32>
    tpu.vector_store %arg22[%c0_227, %c0_228], %186 {strides = array<i32>} : memref<10x32xf32, #tpu.memory_space<vmem>>, vector<10x32xf32>,
    %c0_229 = arith.constant 0 : index
    %c0_230 = arith.constant 0 : index
    %188 = vector.load %arg22[%c0_229, %c0_230] : memref<10x32xf32, #tpu.memory_space<vmem>>, vector<1x32xf32>
    %c0_231 = arith.constant 0 : index
    %c0_232 = arith.constant 0 : index
    %189 = vector.load %arg15[%c0_231, %c0_232] : memref<2x128xf32, #tpu.memory_space<vmem>>, vector<1x32xf32>
    tpu.vector_store %arg15[%c0_231, %c0_232], %188 {strides = array<i32>} : memref<2x128xf32, #tpu.memory_space<vmem>>, vector<1x32xf32>,
    %c1_233 = arith.constant 1 : index
    %c0_234 = arith.constant 0 : index
    %190 = vector.load %arg22[%c1_233, %c0_234] : memref<10x32xf32, #tpu.memory_space<vmem>>, vector<1x32xf32>
    %c0_235 = arith.constant 0 : index
    %c32 = arith.constant 32 : index
    %191 = vector.load %arg15[%c0_235, %c32] : memref<2x128xf32, #tpu.memory_space<vmem>>, vector<1x32xf32>
    tpu.vector_store %arg15[%c0_235, %c32], %190 {strides = array<i32>} : memref<2x128xf32, #tpu.memory_space<vmem>>, vector<1x32xf32>,
    %c2_236 = arith.constant 2 : index
    %c0_237 = arith.constant 0 : index
    %192 = vector.load %arg22[%c2_236, %c0_237] : memref<10x32xf32, #tpu.memory_space<vmem>>, vector<1x32xf32>
    %c0_238 = arith.constant 0 : index
    %c64_239 = arith.constant 64 : index
    %193 = vector.load %arg15[%c0_238, %c64_239] : memref<2x128xf32, #tpu.memory_space<vmem>>, vector<1x32xf32>
    tpu.vector_store %arg15[%c0_238, %c64_239], %192 {strides = array<i32>} : memref<2x128xf32, #tpu.memory_space<vmem>>, vector<1x32xf32>,
    %c3 = arith.constant 3 : index
    %c0_240 = arith.constant 0 : index
    %194 = vector.load %arg22[%c3, %c0_240] : memref<10x32xf32, #tpu.memory_space<vmem>>, vector<1x32xf32>
    %c0_241 = arith.constant 0 : index
    %c96 = arith.constant 96 : index
    %195 = vector.load %arg15[%c0_241, %c96] : memref<2x128xf32, #tpu.memory_space<vmem>>, vector<1x32xf32>
    tpu.vector_store %arg15[%c0_241, %c96], %194 {strides = array<i32>} : memref<2x128xf32, #tpu.memory_space<vmem>>, vector<1x32xf32>,
    %c6_242 = arith.constant 6 : index
    %c0_243 = arith.constant 0 : index
    %196 = vector.load %arg22[%c6_242, %c0_243] : memref<10x32xf32, #tpu.memory_space<vmem>>, vector<1x32xf32>
    %c1_244 = arith.constant 1 : index
    %c0_245 = arith.constant 0 : index
    %197 = vector.load %arg15[%c1_244, %c0_245] : memref<2x128xf32, #tpu.memory_space<vmem>>, vector<1x32xf32>
    tpu.vector_store %arg15[%c1_244, %c0_245], %196 {strides = array<i32>} : memref<2x128xf32, #tpu.memory_space<vmem>>, vector<1x32xf32>,
    %c7_246 = arith.constant 7 : index
    %c0_247 = arith.constant 0 : index
    %198 = vector.load %arg22[%c7_246, %c0_247] : memref<10x32xf32, #tpu.memory_space<vmem>>, vector<1x32xf32>
    %c1_248 = arith.constant 1 : index
    %c32_249 = arith.constant 32 : index
    %199 = vector.load %arg15[%c1_248, %c32_249] : memref<2x128xf32, #tpu.memory_space<vmem>>, vector<1x32xf32>
    tpu.vector_store %arg15[%c1_248, %c32_249], %198 {strides = array<i32>} : memref<2x128xf32, #tpu.memory_space<vmem>>, vector<1x32xf32>,
    %c8 = arith.constant 8 : index
    %c0_250 = arith.constant 0 : index
    %200 = vector.load %arg22[%c8, %c0_250] : memref<10x32xf32, #tpu.memory_space<vmem>>, vector<1x32xf32>
    %c1_251 = arith.constant 1 : index
    %c64_252 = arith.constant 64 : index
    %201 = vector.load %arg15[%c1_251, %c64_252] : memref<2x128xf32, #tpu.memory_space<vmem>>, vector<1x32xf32>
    tpu.vector_store %arg15[%c1_251, %c64_252], %200 {strides = array<i32>} : memref<2x128xf32, #tpu.memory_space<vmem>>, vector<1x32xf32>,
    %c9_253 = arith.constant 9 : index
    %c0_254 = arith.constant 0 : index
    %202 = vector.load %arg22[%c9_253, %c0_254] : memref<10x32xf32, #tpu.memory_space<vmem>>, vector<1x32xf32>
    %c1_255 = arith.constant 1 : index
    %c96_256 = arith.constant 96 : index
    %203 = vector.load %arg15[%c1_255, %c96_256] : memref<2x128xf32, #tpu.memory_space<vmem>>, vector<1x32xf32>
    tpu.vector_store %arg15[%c1_255, %c96_256], %202 {strides = array<i32>} : memref<2x128xf32, #tpu.memory_space<vmem>>, vector<1x32xf32>,
    return
  }
}

</mosaic_0001>

<bundles_post_ra>
// kernel: tpu_custom_call.1
= control target key start
LH: loop header
LB: loop body
LE: loop exit
PB: predicated region body
PF: predicated region fallthrough
CT: control target
= control target key end

     0   :  { %21 = vsyncpa [#allocation10], 0  ;;  %s4563_s0 = inlined_call_operand.hbm [shape: f32[32,64], index: 0, kind: input, shape index: {}]   ;;  %s4564_s1 = inlined_call_operand.vmem [shape: f32[3,64,128], index: 1, kind: input, shape index: {}]   ;;  %s4565_s2 = inlined_call_operand.vmem [shape: f32[3,128,128], index: 2, kind: input, shape index: {}]   ;;  %s4566_s3 = inlined_call_operand.vmem [shape: f32[3,128,64], index: 3, kind: input, shape index: {}]   ;;  %s4567_s4 = inlined_call_operand.hbm [shape: f32[3,64,64], index: 4, kind: input, shape index: {}]   ;;  %s4568_s5 = inlined_call_operand.vmem [shape: f32[3,64,32], index: 5, kind: input, shape index: {}]   ;;  %s4569_s6 = inlined_call_operand.vmem [shape: f32[3,32,32], index: 6, kind: input, shape index: {}]   ;;  %s4570_s7 = inlined_call_operand.vmem [shape: f32[1,128], index: 7, kind: input, shape index: {}]   ;;  %s4571_s8 = inlined_call_operand.vmem [shape: f32[1,128], index: 8, kind: input, shape index: {}]   ;;  %s4572_s9 = inlined_call_operand.vmem [shape: f32[1,64], index: 9, kind: input, shape index: {}]   ;;  %s4573_s10 = inlined_call_operand.vmem [shape: f32[1,64], index: 10, kind: input, shape index: {}]   ;;  %s4574_s11 = inlined_call_operand.vmem [shape: f32[1,32], index: 11, kind: input, shape index: {}]   ;;  %s4575_s12 = inlined_call_operand.vmem [shape: f32[1,32], index: 12, kind: input, shape index: {}]   ;;  %s4576_s13 = inlined_call_operand.hbm [shape: f32[32,128], index: 13, kind: output, shape index: {0}]   ;;  %s4577_s14 = inlined_call_operand.hbm [shape: f32[8,128], index: 14, kind: output, shape index: {1}]   ;;  %s4578_s15 = inlined_call_operand.hbm [shape: f32[2,128], index: 15, kind: output, shape index: {2}]  }
   0x1   :  { %22 = vsyncpa [#allocation13], 0 }
   0x2   :  { %23 = vsyncpa [#allocation11], 0 }
   0x3   :  { %24 = vsyncpa [#allocation16], 0  ;;  %s3647_s18 = smov [#allocation9]   ;;  %s3529_s22 = scalar_lea.hbm %s4563_s0, 512 }
   0x4   :  { %s30_s19 = sshll.u32 %s3647_s18, 4  ;;  %p3530_p0 = scmp.ne.s32.totalorder %s4563_s0, %s3529_s22  ;;  %s31_s19 = int_to_ptr.vmem [resolvable:$true] %s30_s19 }
   0x5   :  { %p3533_p1 = scmp.lt.u32.totalorder %s3529_s22, %s4563_s0 }
   0x7   :  { %p3535_p2 = pnand %p3533_p1, %p3530_p0 }
   0x9   :  { %3538 = shalt.err (!%p3535_p2)
}
   0xa   :  { %s3539_s27 = scalar_lea.vmem %s31_s19, 512  ;;  %p3544_p4 = scmp.lt.s32.totalorder %s31_s19, %s31_s19 }
   0xb   :  { %p3540_p3 = scmp.ne.s32.totalorder %s31_s19, %s3539_s27  ;;  %p3545_p5 = scmp.lt.s32.totalorder %s3539_s27, %s3539_s27 }
   0xd   :  { %p3546_p6 = por %p3545_p5, %p3544_p4 }
   0xf   :  { %p3547_p7 = pnand %p3546_p6, %p3540_p3 }
  0x11   :  { %3550 = shalt.err (!%p3547_p7)
}
  0x12   :  { %s3648_s28 = smov 128   ;;  %s3649_s29 = smov 8  }
  0x13   :  { %36 = dma.hbm_to_vmem [thread:$0]  %s4563_s0, 512, %s31_s19, [#allocation10], %s3648_s28, %s3648_s28, %s3649_s29  }
  0x14   :  { %s3650_s17 = smov [#allocation12]   ;;  %s3551_s22 = scalar_lea.hbm %s4567_s4, 3072 }
  0x15   :  { %s48_s18 = sshll.u32 %s3650_s17, 4  ;;  %p3552_p8 = scmp.ne.s32.totalorder %s4567_s4, %s3551_s22  ;;  %s49_s18 = int_to_ptr.vmem [resolvable:$true] %s48_s18 }
  0x16   :  { %p3555_p9 = scmp.lt.u32.totalorder %s3551_s22, %s4567_s4 }
  0x18   :  { %p3557_p10 = pnand %p3555_p9, %p3552_p8 }
  0x1a   :  { %3560 = shalt.err (!%p3557_p10)
}
  0x1b   :  { %s3561_s27 = scalar_lea.vmem %s49_s18, 3072  ;;  %p3566_p12 = scmp.lt.s32.totalorder %s49_s18, %s49_s18 }
  0x1c   :  { %p3562_p11 = scmp.ne.s32.totalorder %s49_s18, %s3561_s27  ;;  %p3567_p13 = scmp.lt.s32.totalorder %s3561_s27, %s3561_s27 }
  0x1e   :  { %p3568_p0 = por %p3567_p13, %p3566_p12 }
  0x20   :  { %p3569_p1 = pnand %p3568_p0, %p3562_p11 }
  0x22   :  { %3572 = shalt.err (!%p3569_p1)
}
  0x23   :  { %54 = dma.hbm_to_vmem [thread:$0]  %s4567_s4, 3072, %s49_s18, [#allocation13], %s3648_s28, %s3648_s28, %s3649_s29  }
  0x24   :  { %3639 = dma.done.wait [#allocation10], 512  }
  0x25   :  { %3640 = vsyncadd [#allocation10], 4294966784 }
  0x26   :  { %3641 = dma.done.wait [#allocation13], 3072  }
  0x27   :  { %3642 = vsyncadd [#allocation13], 4294964224  ;;  %vm77_vm0 = vcmask 516096   ;;  %v3651_v0 = vmov 0.0|0.0   ;;  %vm3652_vm1 = vmmov 0   ;;  %v3653_v1 = vmov 0.0  }
  0x28   :  { %3136 = vmatprep.subr.bf16.mxu0 %v3651_v0  ;;  %2630 = vmatprep.mubr.msk.f32.mxu0 %vm3652_vm1, %v3653_v1  ;;  %82 = vst [vmem:[#allocation3] sm:$0x1] %v3653_v1  ;;  %83 = vst [vmem:[#allocation3 + $0x11] sm:$0x1] %v3653_v1  ;;  %v116_v2 = vld [vmem:[%s4564_s1] sm:$0xff]  ;;  %v117_v3 = vld [vmem:[%s4564_s1 + $0x8] sm:$0xff] }
  0x29   :  { %84 = vst [vmem:[#allocation3 + $0x12] sm:$0x1] %v3653_v1  ;;  %85 = vst [vmem:[#allocation3 + $0x23] sm:$0x1] %v3653_v1  ;;  %3172 = vmatprep.subr.bf16.mxu1 %v3651_v0  ;;  %2739 = vmatprep.mubr.msk.f32.mxu1 %vm3652_vm1, %v3653_v1  ;;  %v118_v4 = vld [vmem:[%s4564_s1 + $0x10] sm:$0xff]  ;;  %vm97_vm2 = vcmask 523264   ;;  %v3137_v5 = vpack.c.bf16 %v117_v3, %v116_v2 }
  0x2a   :  { %78 = vst.msk [vmem:[#allocation2] sm:$0x1] %vm77_vm0, %v3653_v1  ;;  %79 = vst.msk [vmem:[#allocation2 + $0x11] sm:$0x1] %vm77_vm0, %v3653_v1  ;;  %v119_v6 = vld [vmem:[%s4564_s1 + $0x18] sm:$0xff]  ;;  %v95_v7 = vld [vmem:[#allocation9] sm:$0xff] }
  0x2b   :  { %80 = vst.msk [vmem:[#allocation2 + $0x12] sm:$0x1] %vm77_vm0, %v3653_v1  ;;  %81 = vst.msk [vmem:[#allocation2 + $0x23] sm:$0x1] %vm77_vm0, %v3653_v1  ;;  %3138 = vmatpush3.bf16.msra.mxu0 %v3137_v5  ;;  %v3140_v8 = vpack.c.bf16 %v119_v6, %v118_v4  ;;  %v96_v9 = vld [vmem:[#allocation9 + $0x8] sm:$0xff]  ;;  %v120_v10 = vld [vmem:[%s4564_s1 + $0x20] sm:$0xff] }
  0x2c   :  { %86 = vst.msk [vmem:[#allocation4] sm:$0x1] %vm77_vm0, %v3653_v1  ;;  %87 = vst.msk [vmem:[#allocation4 + $0x9] sm:$0x1] %vm77_vm0, %v3653_v1  ;;  %3139 = vmatprep.subr.bf16.mxu0 %v3651_v0  ;;  %v121_v11 = vld [vmem:[%s4564_s1 + $0x28] sm:$0xff]  ;;  %v100_v12 = vld [vmem:[#allocation9 + $0x10] sm:$0xff] }
  0x2d   :  { %88 = vst.msk [vmem:[#allocation4 + $0xa] sm:$0x1] %vm77_vm0, %v3653_v1  ;;  %89 = vst.msk [vmem:[#allocation4 + $0x13] sm:$0x1] %vm77_vm0, %v3653_v1  ;;  %v101_v13 = vld [vmem:[#allocation9 + $0x18] sm:$0xff]  ;;  %v3143_v14 = vpack.c.bf16 %v121_v11, %v120_v10  ;;  %v122_v15 = vld [vmem:[%s4564_s1 + $0x30] sm:$0xff] }
  0x2e   :  { %98 = vst.msk [vmem:[#allocation2 + $0x1] sm:$0xff] %vm97_vm2, %v95_v7  ;;  %99 = vst.msk [vmem:[#allocation2 + $0x9] sm:$0xff] %vm97_vm2, %v96_v9  ;;  %v123_v16 = vld [vmem:[%s4564_s1 + $0x38] sm:$0xff]  ;;  %v511_v17 = vld [vmem:[%s4565_s2] sm:$0xff]  ;;  %vm1529_vm3 = vcmask 517120   ;;  %vm1538_vm4 = vcmask 519168  }
  0x2f   :  { %102 = vst.msk [vmem:[#allocation2 + $0x13] sm:$0xff] %vm97_vm2, %v100_v12  ;;  %103 = vst.msk [vmem:[#allocation2 + $0x1b] sm:$0xff] %vm97_vm2, %v101_v13  ;;  %3141 = vmatpush3.bf16.msra.mxu0 %v3140_v8  ;;  %v512_v18 = vld [vmem:[%s4565_s2 + $0x8] sm:$0xff]  ;;  %v3146_v20 = vpack.c.bf16 %v123_v16, %v122_v15  ;;  %v2234_v21 = vld [vmem:[%s4564_s1 + $0x40] sm:$0xff]  ;;  %vm90_vm5 = vcmask 253952   ;;  %vm1546_vm6 = vcmask 1043968  }
  0x30   :  { %3142 = vmatprep.subr.bf16.mxu0 %v3651_v0  ;;  %v3173_v19 = vpack.c.bf16 %v512_v18, %v511_v17  ;;  %v2235_v22 = vld [vmem:[%s4564_s1 + $0x48] sm:$0xff]  ;;  %v513_v23 = vld [vmem:[%s4565_s2 + $0x10] sm:$0xff]  ;;  %v514_v26 = vld [vmem:[%s4565_s2 + $0x18] sm:$0xff]  ;;  %91 = vst.msk [vmem:[#allocation5] sm:$0x1] %vm90_vm5, %v3653_v1  ;;  %vm1851_vm7 = vcmask 261120  }
  0x31   :  { %v3149_v25 = vpack.c.bf16 %v2235_v22, %v2234_v21  ;;  %v515_v27 = vld [vmem:[%s4565_s2 + $0x20] sm:$0xff]  ;;  %v2236_v28 = vld [vmem:[%s4564_s1 + $0x50] sm:$0xff]  ;;  %v2237_v29 = vld [vmem:[%s4564_s1 + $0x58] sm:$0xff]  ;;  %v3176_v30 = vpack.c.bf16 %v514_v26, %v513_v23  ;;  %92 = vst.msk [vmem:[#allocation5 + $0x5] sm:$0x1] %vm90_vm5, %v3653_v1  ;;  %vm1856_vm8 = vcmask 257024  }
  0x32   :  { %3174 = vmatpush3.bf16.msra.mxu1 %v3173_v19  ;;  %v516_v31 = vld [vmem:[%s4565_s2 + $0x28] sm:$0xff]  ;;  %v3152_v34 = vpack.c.bf16 %v2237_v29, %v2236_v28  ;;  %v2238_v35 = vld [vmem:[%s4564_s1 + $0x60] sm:$0xff]  ;;  %v2240_v39 = vld [vmem:[%s4564_s1 + $0x70] sm:$0xff]  ;;  %93 = vst.msk [vmem:[#allocation5 + $0x6] sm:$0x1] %vm90_vm5, %v3653_v1  ;;  %vm2138_vm9 = vcmask 254976  }
  0x33   :  { %3144 = vmatpush3.bf16.msra.mxu0 %v3143_v14  ;;  %3175 = vmatprep.subr.bf16.mxu1 %v3651_v0  ;;  %v3179_v32 = vpack.c.bf16 %v516_v31, %v515_v27  ;;  %v2239_v36 = vld [vmem:[%s4564_s1 + $0x68] sm:$0xff]  ;;  %v2241_v40 = vld [vmem:[%s4564_s1 + $0x78] sm:$0xff]  ;;  %v2247_v44 = vld [vmem:[%s4564_s1 + $0x80] sm:$0xff]  ;;  %94 = vst.msk [vmem:[#allocation5 + $0xb] sm:$0x1] %vm90_vm5, %v3653_v1  ;;  %s3656_s4 = smov 32  }
  0x34   :  { %3145 = vmatprep.subr.bf16.mxu0 %v3651_v0  ;;  %v3155_v38 = vpack.c.bf16 %v2239_v36, %v2238_v35  ;;  %v3158_v42 = vpack.c.bf16 %v2241_v40, %v2240_v39  ;;  %v2248_v45 = vld [vmem:[%s4564_s1 + $0x88] sm:$0xff]  ;;  %v2249_v48 = vld [vmem:[%s4564_s1 + $0x90] sm:$0xff]  ;;  %v2250_v49 = vld [vmem:[%s4564_s1 + $0x98] sm:$0xff] }
  0x35   :  { %v111_v24 = vld [vmem:[#allocation2] sm:$0xff]  ;;  %v112_v33 = vld [vmem:[#allocation2 + $0x8] sm:$0xff]  ;;  %v3161_v47 = vpack.c.bf16 %v2248_v45, %v2247_v44  ;;  %v3164_v51 = vpack.c.bf16 %v2250_v49, %v2249_v48  ;;  %v2253_v56 = vld [vmem:[%s4564_s1 + $0xb0] sm:$0xff] }
  0x36   :  { %3177 = vmatpush3.bf16.msra.mxu1 %v3176_v30  ;;  %v113_v37 = vld [vmem:[#allocation2 + $0x10] sm:$0xff]  ;;  %v114_v41 = vld [vmem:[#allocation2 + $0x18] sm:$0xff]  ;;  %v115_v43 = vld [vmem:[#allocation2 + $0x20] sm:$0x3] }
  0x37   :  { %3147 = vmatpush3.bf16.msra.mxu0 %v3146_v20  ;;  %3178 = vmatprep.subr.bf16.mxu1 %v3651_v0  ;;  %v234_v46 = vld [vmem:[#allocation2 + $0x1] sm:$0xff]  ;;  %v235_v50 = vld [vmem:[#allocation2 + $0x9] sm:$0xff]  ;;  %v236_v54 = vld [vmem:[#allocation2 + $0x11] sm:$0xff] }
  0x38   :  { %3148 = vmatprep.subr.bf16.mxu0 %v3651_v0  ;;  %v2251_v52 = vld [vmem:[%s4564_s1 + $0xa0] sm:$0xff]  ;;  %v2252_v53 = vld [vmem:[%s4564_s1 + $0xa8] sm:$0xff]  ;;  %v2254_v57 = vld [vmem:[%s4564_s1 + $0xb8] sm:$0xff] }
  0x39   :  { %v3167_v55 = vpack.c.bf16 %v2252_v53, %v2251_v52  ;;  %v237_v58 = vld [vmem:[#allocation2 + $0x19] sm:$0xff]  ;;  %v3170_v59 = vpack.c.bf16 %v2254_v57, %v2253_v56  ;;  %v238_v60 = vld [vmem:[#allocation2 + $0x21] sm:$0x3]  ;;  %v359_v62 = vld [vmem:[#allocation2 + $0xa] sm:$0xff] }
  0x3a   :  { %2631 = vmatmul.mubr.msk.f32.vlgmr.msra.gmra.mrb[0].mxu0 %vm97_vm2, %v111_v24  ;;  %3180 = vmatpush3.bf16.msra.mxu1 %v3179_v32  ;;  %v358_v61 = vld [vmem:[#allocation2 + $0x2] sm:$0xff]  ;;  %v360_v63 = vld [vmem:[#allocation2 + $0x12] sm:$0xff]  ;;  %v361_v2 = vld [vmem:[#allocation2 + $0x1a] sm:$0xff] }
  0x3b   :  { %3150 = vmatpush3.bf16.msra.mxu0 %v3149_v25  ;;  %2633 = vmatprep.mubr.msk.f32.mxu0 %vm3652_vm1, %v3653_v1  ;;  %v362_v3 = vld [vmem:[#allocation2 + $0x22] sm:$0x3]  ;;  %v517_v4 = vld [vmem:[%s4565_s2 + $0x30] sm:$0xff]  ;;  %v518_v5 = vld [vmem:[%s4565_s2 + $0x38] sm:$0xff] }
  0x3c   :  { %3151 = vmatprep.subr.bf16.mxu0 %v3651_v0  ;;  %3181 = vmatprep.subr.bf16.mxu1 %v3651_v0  ;;  %v3182_v6 = vpack.c.bf16 %v518_v5, %v517_v4  ;;  %v519_v7 = vld [vmem:[%s4565_s2 + $0x40] sm:$0xff]  ;;  %v520_v8 = vld [vmem:[%s4565_s2 + $0x48] sm:$0xff]  ;;  %v521_v10 = vld [vmem:[%s4565_s2 + $0x50] sm:$0xff] }
  0x3d   :  { %v3185_v9 = vpack.c.bf16 %v520_v8, %v519_v7  ;;  %v522_v11 = vld [vmem:[%s4565_s2 + $0x58] sm:$0xff]  ;;  %v523_v13 = vld [vmem:[%s4565_s2 + $0x60] sm:$0xff]  ;;  %v524_v14 = vld [vmem:[%s4565_s2 + $0x68] sm:$0xff] }
  0x3e   :  { %2634 = vmatmul.mubr.msk.f32.gmra.mrb[2].mxu0 %vm97_vm2, %v112_v33  ;;  %3183 = vmatpush3.bf16.msra.mxu1 %v3182_v6  ;;  %v3188_v12 = vpack.c.bf16 %v522_v11, %v521_v10  ;;  %v3191_v15 = vpack.c.bf16 %v524_v14, %v523_v13  ;;  %v525_v16 = vld [vmem:[%s4565_s2 + $0x70] sm:$0xff]  ;;  %v526_v17 = vld [vmem:[%s4565_s2 + $0x78] sm:$0xff]  ;;  %v889_v19 = vld [vmem:[%s4566_s3] sm:$0xff] }
  0x3f   :  { %3153 = vmatpush3.bf16.msra.mxu0 %v3152_v34  ;;  %2636 = vmatprep.mubr.msk.f32.mxu0 %vm3652_vm1, %v3653_v1  ;;  %v3194_v18 = vpack.c.bf16 %v526_v17, %v525_v16  ;;  %v890_v20 = vld [vmem:[%s4566_s3 + $0x8] sm:$0xff]  ;;  %v891_v21 = vld [vmem:[%s4566_s3 + $0x10] sm:$0xff]  ;;  %v892_v23 = vld [vmem:[%s4566_s3 + $0x18] sm:$0xff] }
  0x40   :  { %3154 = vmatprep.subr.bf16.mxu0 %v3651_v0  ;;  %3184 = vmatprep.subr.bf16.mxu1 %v3651_v0  ;;  %v3245_v22 = vpack.c.bf16 %v890_v20, %v889_v19  ;;  %v3248_v24 = vpack.c.bf16 %v892_v23, %v891_v21  ;;  %v2228_v25 = vld [vmem:[%s4570_s7] ss:$0 sm:$0xff]  ;;  %v2262_v35 = vld [vmem:[%s4565_s2 + $0x88] sm:$0xff]  ;;  %v2263_v40 = vld [vmem:[%s4565_s2 + $0x90] sm:$0xff]  ;;  %s3655_s7 = smov [#allocation15]  }
  0x41   :  { %v2261_v34 = vld [vmem:[%s4565_s2 + $0x80] sm:$0xff]  ;;  %v2266_v48 = vld [vmem:[%s4565_s2 + $0xa8] sm:$0xff]  ;;  %v2276_v10 = vld [vmem:[%s4565_s2 + $0xf8] sm:$0xff]  ;;  %s2201_s1 = sshll.u32 %s3655_s7, 4  ;;  %s2202_s1 = int_to_ptr.vmem [resolvable:$true] %s2201_s1 }
  0x42   :  { %2637 = vmatmul.mubr.msk.f32.gmra.mrb[4].mxu0 %vm97_vm2, %v113_v37  ;;  %3186 = vmatpush3.bf16.msra.mxu1 %v3185_v9  ;;  %v3197_v39 = vpack.c.bf16 %v2262_v35, %v2261_v34  ;;  %v2273_v5 = vld [vmem:[%s4565_s2 + $0xe0] sm:$0xff]  ;;  %v2274_v6 = vld [vmem:[%s4565_s2 + $0xe8] sm:$0xff]  ;;  %v2275_v9 = vld [vmem:[%s4565_s2 + $0xf0] sm:$0xff]  ;;  %p3578_p3 = scmp.lt.s32.totalorder %s2202_s1, %s2202_s1 }
  0x43   :  { %2639 = vmatprep.mubr.msk.f32.mxu0 %vm3652_vm1, %v3653_v1  ;;  %3156 = vmatpush3.bf16.msra.mxu0 %v3155_v38  ;;  %v3215_v8 = vpack.c.bf16 %v2274_v6, %v2273_v5  ;;  %v2277_v13 = vld [vmem:[%s4565_s2 + $0x100] sm:$0xff]  ;;  %v2278_v14 = vld [vmem:[%s4565_s2 + $0x108] sm:$0xff]  ;;  %v2279_v17 = vld [vmem:[%s4565_s2 + $0x110] sm:$0xff] }
  0x44   :  { %3157 = vmatprep.subr.bf16.mxu0 %v3651_v0  ;;  %3187 = vmatprep.subr.bf16.mxu1 %v3651_v0  ;;  %v3221_v16 = vpack.c.bf16 %v2278_v14, %v2277_v13  ;;  %v2281_v20 = vld [vmem:[%s4565_s2 + $0x120] sm:$0xff]  ;;  %v2282_v21 = vld [vmem:[%s4565_s2 + $0x128] sm:$0xff]  ;;  %v2283_v23 = vld [vmem:[%s4565_s2 + $0x130] sm:$0xff] }
  0x45   :  { %v2289_v35 = vld [vmem:[%s4565_s2 + $0x160] sm:$0xff] }
  0x46   :  { %2640 = vmatmul.mubr.msk.f32.gmra.mrb[6].mxu0 %vm97_vm2, %v114_v41  ;;  %3189 = vmatpush3.bf16.msra.mxu1 %v3188_v12  ;;  %v2264_v41 = vld [vmem:[%s4565_s2 + $0x98] sm:$0xff]  ;;  %v3218_v12 = vpack.c.bf16 %v2276_v10, %v2275_v9  ;;  %v2294_v14 = vld [vmem:[%s4566_s3 + $0x80] sm:$0xff] }
  0x47   :  { %2642 = vmatprep.mubr.msk.f32.mxu0 %vm3652_vm1, %v3653_v1  ;;  %3159 = vmatpush3.bf16.msra.mxu0 %v3158_v42 }
  0x48   :  { %3160 = vmatprep.subr.bf16.mxu0 %v3651_v0  ;;  %3190 = vmatprep.subr.bf16.mxu1 %v3651_v0 }
  0x4a   :  { %2643 = vmatmul.mubr.msk.f32.gmra.mrb[8].mxu0 %vm97_vm2, %v115_v43  ;;  %3192 = vmatpush3.bf16.msra.mxu1 %v3191_v15 }
  0x4b   :  { %2661 = vmatprep.mubr.msk.f32.mxu0 %vm3652_vm1, %v3653_v1  ;;  %3193 = vmatprep.subr.bf16.mxu1 %v3651_v0 }
  0x4e   :  { %2662 = vmatmul.mubr.msk.f32.vlgmr.msra.gmra.mrb[0].mxu0 %vm97_vm2, %v234_v46  ;;  %3195 = vmatpush3.bf16.msra.mxu1 %v3194_v18  ;;  %v3200_v46 = vpack.c.bf16 %v2264_v41, %v2263_v40  ;;  %v2280_v18 = vld [vmem:[%s4565_s2 + $0x118] sm:$0xff] }
  0x4f   :  { %3162 = vmatpush3.bf16.msra.mxu0 %v3161_v47  ;;  %2664 = vmatprep.mubr.msk.f32.mxu0 %vm3652_vm1, %v3653_v1  ;;  %v2265_v47 = vld [vmem:[%s4565_s2 + $0xa0] sm:$0xff]  ;;  %v3224_v19 = vpack.c.bf16 %v2280_v18, %v2279_v17 }
  0x50   :  { %3163 = vmatprep.subr.bf16.mxu0 %v3651_v0  ;;  %3196 = vmatprep.subr.bf16.mxu1 %v3651_v0  ;;  %v3203_v53 = vpack.c.bf16 %v2266_v48, %v2265_v47  ;;  %v894_v47 = vld [vmem:[%s4566_s3 + $0x28] sm:$0xff] }
  0x52   :  { %2665 = vmatmul.mubr.msk.f32.gmra.mrb[2].mxu0 %vm97_vm2, %v235_v50 }
  0x53   :  { %3165 = vmatpush3.bf16.msra.mxu0 %v3164_v51  ;;  %2667 = vmatprep.mubr.msk.f32.mxu0 %vm3652_vm1, %v3653_v1 }
  0x54   :  { %3166 = vmatprep.subr.bf16.mxu0 %v3651_v0 }
  0x56   :  { %2668 = vmatmul.mubr.msk.f32.gmra.mrb[4].mxu0 %vm97_vm2, %v236_v54  ;;  %v2267_v54 = vld [vmem:[%s4565_s2 + $0xb0] sm:$0xff] }
  0x57   :  { %2670 = vmatprep.mubr.msk.f32.mxu0 %vm3652_vm1, %v3653_v1  ;;  %3168 = vmatpush3.bf16.msra.mxu0 %v3167_v55  ;;  %v2268_v55 = vld [vmem:[%s4565_s2 + $0xb8] sm:$0xff] }
  0x58   :  { %3169 = vmatprep.subr.bf16.mxu0 %v3651_v0  ;;  %v3206_v57 = vpack.c.bf16 %v2268_v55, %v2267_v54  ;;  %v899_v55 = vld [vmem:[%s4566_s3 + $0x50] sm:$0xff] }
  0x5a   :  { %2671 = vmatmul.mubr.msk.f32.gmra.mrb[6].mxu0 %vm97_vm2, %v237_v58 }
  0x5b   :  { %2673 = vmatprep.mubr.msk.f32.mxu0 %vm3652_vm1, %v3653_v1  ;;  %3171 = vmatpush3.bf16.msra.mxu0 %v3170_v59  ;;  %v2269_v59 = vld [vmem:[%s4565_s2 + $0xc0] sm:$0xff] }
  0x5c   :  { %3244 = vmatprep.subr.bf16.mxu0 %v3651_v0 }
  0x5e   :  { %2674 = vmatmul.mubr.msk.f32.gmra.mrb[8].mxu0 %vm97_vm2, %v238_v60  ;;  %v2270_v60 = vld [vmem:[%s4565_s2 + $0xc8] sm:$0xff] }
  0x5f   :  { %2692 = vmatprep.mubr.msk.f32.mxu0 %vm3652_vm1, %v3653_v1 }
  0x62   :  { %2693 = vmatmul.mubr.msk.f32.vlgmr.msra.gmra.mrb[0].mxu0 %vm97_vm2, %v358_v61 }
  0x63   :  { %2695 = vmatprep.mubr.msk.f32.mxu0 %vm3652_vm1, %v3653_v1  ;;  %3246 = vmatpush3.bf16.msra.mxu0 %v3245_v22  ;;  %v3227_v22 = vpack.c.bf16 %v2282_v21, %v2281_v20  ;;  %v2296_v20 = vld [vmem:[%s4566_s3 + $0x90] sm:$0xff]  ;;  %v2297_v21 = vld [vmem:[%s4566_s3 + $0x98] sm:$0xff] }
  0x64   :  { %3247 = vmatprep.subr.bf16.mxu0 %v3651_v0 }
  0x66   :  { %2696 = vmatmul.mubr.msk.f32.gmra.mrb[2].mxu0 %vm97_vm2, %v359_v62  ;;  %v3209_v62 = vpack.c.bf16 %v2270_v60, %v2269_v59  ;;  %v902_v59 = vld [vmem:[%s4566_s3 + $0x68] sm:$0xff] }
  0x67   :  { %2698 = vmatprep.mubr.msk.f32.mxu0 %vm3652_vm1, %v3653_v1  ;;  %3249 = vmatpush3.bf16.msra.mxu0 %v3248_v24  ;;  %v2284_v24 = vld [vmem:[%s4565_s2 + $0x138] sm:$0xff] }
  0x68   :  { %3250 = vmatprep.subr.bf16.mxu0 %v3651_v0 }
  0x6a   :  { %2699 = vmatmul.mubr.msk.f32.gmra.mrb[4].mxu0 %vm97_vm2, %v360_v63 }
  0x6b   :  { %2701 = vmatprep.mubr.msk.f32.mxu0 %vm3652_vm1, %v3653_v1 }
  0x6e   :  { %2702 = vmatmul.mubr.msk.f32.gmra.mrb[6].mxu0 %vm97_vm2, %v361_v2  ;;  %v2271_v2 = vld [vmem:[%s4565_s2 + $0xd0] sm:$0xff] }
  0x6f   :  { %2704 = vmatprep.mubr.msk.f32.mxu0 %vm3652_vm1, %v3653_v1 }
  0x72   :  { %2705 = vmatmul.mubr.msk.f32.gmra.mrb[8].mxu0 %vm97_vm2, %v362_v3  ;;  %v2272_v3 = vld [vmem:[%s4565_s2 + $0xd8] sm:$0xff] }
  0x73   :  { %2880 = vmatprep.mubr.msk.f32.mxu0 %vm3652_vm1, %v3653_v1  ;;  %v3212_v4 = vpack.c.bf16 %v2272_v3, %v2271_v2  ;;  %v2260_v2 = vld [vmem:[%s4571_s8] ss:$0 sm:$0xff] }
 0x135   :  { %v453_v26 = vpop.f32.mrb[0].mxu0 }
 0x136   :  { %v4002_v27 = vadd.f32 %v2228_v25, %v453_v26  ;;  %v2694_v28 = vpop.f32.mrb[1].mxu0  ;;  %v3230_v26 = vpack.c.bf16 %v2284_v24, %v2283_v23 }
 0x137   :  { %v2286_v28 = vld [vmem:[%s4565_s2 + $0x148] sm:$0xff] }
 0x138   :  { %v489_v29 = vmax.f32 %v4002_v27, 0.0  ;;  %v2285_v27 = vld [vmem:[%s4565_s2 + $0x140] sm:$0xff] }
 0x139   :  { %v458_v30 = vpop.f32.mrb[2].mxu0 }
 0x13a   :  { %491 = vst [vmem:[#allocation3 + $0x1] sm:$0xff] %v489_v29  ;;  %v4007_v31 = vadd.f32 %v2228_v25, %v458_v30  ;;  %v2697_v32 = vpop.f32.mrb[3].mxu0  ;;  %v3233_v30 = vpack.c.bf16 %v2286_v28, %v2285_v27  ;;  %v2298_v27 = vld [vmem:[%s4566_s3 + $0xa0] sm:$0xff]  ;;  %v2299_v28 = vld [vmem:[%s4566_s3 + $0xa8] sm:$0xff] }
 0x13b   :  { %v2288_v32 = vld [vmem:[%s4565_s2 + $0x158] sm:$0xff] }
 0x13c   :  { %v490_v33 = vmax.f32 %v4007_v31, 0.0  ;;  %v2287_v31 = vld [vmem:[%s4565_s2 + $0x150] sm:$0xff] }
 0x13d   :  { %v463_v36 = vpop.f32.mrb[4].mxu0  ;;  %v3236_v34 = vpack.c.bf16 %v2288_v32, %v2287_v31  ;;  %v2300_v32 = vld [vmem:[%s4566_s3 + $0xb0] sm:$0xff] }
 0x13e   :  { %492 = vst [vmem:[#allocation3 + $0x9] sm:$0xff] %v490_v33  ;;  %v3426_v37 = vadd.f32 %v2228_v25, %v463_v36  ;;  %v2700_v38 = vpop.f32.mrb[5].mxu0  ;;  %v2290_v36 = vld [vmem:[%s4565_s2 + $0x168] sm:$0xff] }
 0x13f   :  { %v2291_v38 = vld [vmem:[%s4565_s2 + $0x170] sm:$0xff] }
 0x140   :  { %484 = vst [vmem:[#allocation6 + $0x10] sm:$0xff] %v3426_v37  ;;  %v3239_v37 = vpack.c.bf16 %v2290_v36, %v2289_v35 }
 0x141   :  { %v468_v42 = vpop.f32.mrb[6].mxu0  ;;  %v506_v43 = vld [vmem:[#allocation3] sm:$0xff] }
 0x142   :  { %v3427_v44 = vadd.f32 %v2228_v25, %v468_v42  ;;  %v2703_v45 = vpop.f32.mrb[7].mxu0  ;;  %2740 = vmatmul.mubr.f32.vlgmr.msra.gmra.mrb[0].mxu1 %v506_v43 }
 0x143   :  { %3198 = vmatpush3.bf16.msra.mxu1 %v3197_v39  ;;  %2742 = vmatprep.mubr.msk.f32.mxu1 %vm3652_vm1, %v3653_v1  ;;  %v2292_v39 = vld [vmem:[%s4565_s2 + $0x178] sm:$0xff] }
 0x144   :  { %485 = vst [vmem:[#allocation6 + $0x18] sm:$0xff] %v3427_v44  ;;  %3199 = vmatprep.subr.bf16.mxu1 %v3651_v0  ;;  %v3242_v40 = vpack.c.bf16 %v2292_v39, %v2291_v38  ;;  %v2303_v38 = vld [vmem:[%s4566_s3 + $0xc8] sm:$0xff] }
 0x145   :  { %v473_v49 = vpop.f32.mrb[8].mxu0  ;;  %v507_v50 = vld [vmem:[#allocation3 + $0x8] sm:$0xff] }
 0x146   :  { %v3428_v51 = vadd.f32 %v2228_v25, %v473_v49  ;;  %v2706_v52 = vpop.f32.mrb[9].mxu0  ;;  %2743 = vmatmul.mubr.f32.gmra.mrb[2].mxu1 %v507_v50  ;;  %v739_v41 = vld [vmem:[#allocation3 + $0x2] sm:$0xff]  ;;  %v740_v42 = vld [vmem:[#allocation3 + $0xa] sm:$0xff] }
 0x147   :  { %3201 = vmatpush3.bf16.msra.mxu1 %v3200_v46  ;;  %2745 = vmatprep.mubr.msk.f32.mxu1 %vm3652_vm1, %v3653_v1  ;;  %v893_v46 = vld [vmem:[%s4566_s3 + $0x20] sm:$0xff]  ;;  %v895_v49 = vld [vmem:[%s4566_s3 + $0x30] sm:$0xff]  ;;  %v896_v50 = vld [vmem:[%s4566_s3 + $0x38] sm:$0xff] }
 0x148   :  { %486 = vst [vmem:[#allocation6 + $0x20] sm:$0x3] %v3428_v51  ;;  %3202 = vmatprep.subr.bf16.mxu1 %v3651_v0  ;;  %v3251_v48 = vpack.c.bf16 %v894_v47, %v893_v46  ;;  %v3254_v51 = vpack.c.bf16 %v896_v50, %v895_v49  ;;  %v897_v52 = vld [vmem:[%s4566_s3 + $0x40] sm:$0xff]  ;;  %v2308_v47 = vld [vmem:[%s4566_s3 + $0xf0] sm:$0xff] }
 0x14a   :  { %3252 = vmatpush3.bf16.msra.mxu0 %v3251_v48  ;;  %v2309_v48 = vld [vmem:[%s4566_s3 + $0xf8] sm:$0xff] }
 0x14b   :  { %v493_v56 = vld [vmem:[#allocation6 + $0x12] sm:$0xff]  ;;  %3204 = vmatpush3.bf16.msra.mxu1 %v3203_v53  ;;  %3253 = vmatprep.subr.bf16.mxu0 %v3651_v0  ;;  %v3290_v50 = vpack.c.bf16 %v2309_v48, %v2308_v47  ;;  %v1325_v48 = vld [vmem:[#allocation12 + $0x50] sm:$0xff] }
 0x14c   :  { %3205 = vmatprep.subr.bf16.mxu1 %v3651_v0  ;;  %v495_v58 = vmax.f32 %v493_v56, 0.0  ;;  %v898_v53 = vld [vmem:[%s4566_s3 + $0x48] sm:$0xff]  ;;  %v900_v56 = vld [vmem:[%s4566_s3 + $0x58] sm:$0xff] }
 0x14d   :  { %v3257_v54 = vpack.c.bf16 %v898_v53, %v897_v52  ;;  %v2311_v52 = vld [vmem:[%s4566_s3 + $0x108] sm:$0xff] }
 0x14e   :  { %497 = vst [vmem:[#allocation3 + $0x13] sm:$0xff] %v495_v58  ;;  %3255 = vmatpush3.bf16.msra.mxu0 %v3254_v51  ;;  %v901_v58 = vld [vmem:[%s4566_s3 + $0x60] sm:$0xff] }
 0x14f   :  { %v494_v61 = vld [vmem:[#allocation6 + $0x1a] sm:$0xff]  ;;  %3207 = vmatpush3.bf16.msra.mxu1 %v3206_v57  ;;  %3256 = vmatprep.subr.bf16.mxu0 %v3651_v0  ;;  %v3260_v57 = vpack.c.bf16 %v900_v56, %v899_v55  ;;  %v3263_v60 = vpack.c.bf16 %v902_v59, %v901_v58  ;;  %v2310_v51 = vld [vmem:[%s4566_s3 + $0x100] sm:$0xff]  ;;  %v2315_v59 = vld [vmem:[%s4566_s3 + $0x128] sm:$0xff] }
 0x150   :  { %3208 = vmatprep.subr.bf16.mxu1 %v3651_v0  ;;  %v496_v63 = vmax.f32 %v494_v61, 0.0  ;;  %v903_v61 = vld [vmem:[%s4566_s3 + $0x70] sm:$0xff]  ;;  %v3293_v53 = vpack.c.bf16 %v2311_v52, %v2310_v51  ;;  %v2313_v55 = vld [vmem:[%s4566_s3 + $0x118] sm:$0xff]  ;;  %v2314_v58 = vld [vmem:[%s4566_s3 + $0x120] sm:$0xff] }
 0x151   :  { %v1327_v52 = vld [vmem:[#allocation12 + $0x60] sm:$0xff] }
 0x152   :  { %498 = vst [vmem:[#allocation3 + $0x1b] sm:$0xff] %v496_v63  ;;  %3258 = vmatpush3.bf16.msra.mxu0 %v3257_v54  ;;  %v2312_v54 = vld [vmem:[%s4566_s3 + $0x110] sm:$0xff] }
 0x153   :  { %3210 = vmatpush3.bf16.msra.mxu1 %v3209_v62  ;;  %3259 = vmatprep.subr.bf16.mxu0 %v3651_v0  ;;  %v904_v62 = vld [vmem:[%s4566_s3 + $0x78] sm:$0xff] }
 0x154   :  { %3211 = vmatprep.subr.bf16.mxu1 %v3651_v0  ;;  %v3266_v63 = vpack.c.bf16 %v904_v62, %v903_v61  ;;  %v3299_v61 = vpack.c.bf16 %v2315_v59, %v2314_v58  ;;  %v2316_v62 = vld [vmem:[%s4566_s3 + $0x130] sm:$0xff]  ;;  %v1427_v59 = vld [vmem:[#allocation12 + $0x80] sm:$0xff] }
 0x155   :  { %v508_v7 = vld [vmem:[#allocation3 + $0x10] sm:$0xff] }
 0x156   :  { %2746 = vmatmul.mubr.f32.gmra.mrb[4].mxu1 %v508_v7  ;;  %v624_v25 = vld [vmem:[#allocation3 + $0x11] sm:$0xff]  ;;  %3261 = vmatpush3.bf16.msra.mxu0 %v3260_v57  ;;  %v3296_v57 = vpack.c.bf16 %v2313_v55, %v2312_v54 }
 0x157   :  { %2748 = vmatprep.mubr.msk.f32.mxu1 %vm3652_vm1, %v3653_v1  ;;  %3213 = vmatpush3.bf16.msra.mxu1 %v3212_v4  ;;  %v741_v43 = vld [vmem:[#allocation3 + $0x12] sm:$0xff] }
 0x158   :  { %3214 = vmatprep.subr.bf16.mxu1 %v3651_v0  ;;  %3262 = vmatprep.subr.bf16.mxu0 %v3651_v0  ;;  %v1329_v55 = vld [vmem:[#allocation12 + $0x70] sm:$0xff] }
 0x159   :  { %v509_v11 = vld [vmem:[#allocation3 + $0x18] sm:$0xff]  ;;  %v510_v15 = vld [vmem:[#allocation3 + $0x20] sm:$0x3]  ;;  %v743_v45 = vld [vmem:[#allocation3 + $0x22] sm:$0x3] }
 0x15a   :  { %2749 = vmatmul.mubr.f32.gmra.mrb[6].mxu1 %v509_v11  ;;  %v742_v44 = vld [vmem:[#allocation3 + $0x1a] sm:$0xff]  ;;  %3264 = vmatpush3.bf16.msra.mxu0 %v3263_v60 }
 0x15b   :  { %2751 = vmatprep.mubr.msk.f32.mxu1 %vm3652_vm1, %v3653_v1  ;;  %3216 = vmatpush3.bf16.msra.mxu1 %v3215_v8 }
 0x15c   :  { %3217 = vmatprep.subr.bf16.mxu1 %v3651_v0  ;;  %3265 = vmatprep.subr.bf16.mxu0 %v3651_v0 }
 0x15e   :  { %2752 = vmatmul.mubr.f32.gmra.mrb[8].mxu1 %v510_v15  ;;  %3267 = vmatpush3.bf16.msra.mxu0 %v3266_v63  ;;  %v2295_v15 = vld [vmem:[%s4566_s3 + $0x88] sm:$0xff]  ;;  %v2317_v63 = vld [vmem:[%s4566_s3 + $0x138] sm:$0xff] }
 0x15f   :  { %3219 = vmatpush3.bf16.msra.mxu1 %v3218_v12  ;;  %2786 = vmatprep.mubr.msk.f32.mxu1 %vm3652_vm1, %v3653_v1 }
 0x160   :  { %3220 = vmatprep.subr.bf16.mxu1 %v3651_v0  ;;  %3268 = vmatprep.subr.bf16.mxu0 %v3651_v0 }
 0x162   :  { %2787 = vmatmul.mubr.f32.vlgmr.msra.gmra.mrb[0].mxu1 %v489_v29  ;;  %v625_v29 = vld [vmem:[#allocation3 + $0x19] sm:$0xff] }
 0x163   :  { %3222 = vmatpush3.bf16.msra.mxu1 %v3221_v16  ;;  %2789 = vmatprep.mubr.msk.f32.mxu1 %vm3652_vm1, %v3653_v1 }
 0x164   :  { %3223 = vmatprep.subr.bf16.mxu1 %v3651_v0 }
 0x166   :  { %2790 = vmatmul.mubr.f32.gmra.mrb[2].mxu1 %v490_v33  ;;  %v626_v33 = vld [vmem:[#allocation3 + $0x21] sm:$0x3] }
 0x167   :  { %3225 = vmatpush3.bf16.msra.mxu1 %v3224_v19  ;;  %2792 = vmatprep.mubr.msk.f32.mxu1 %vm3652_vm1, %v3653_v1  ;;  %v3269_v19 = vpack.c.bf16 %v2295_v15, %v2294_v14  ;;  %v2325_v14 = vld [vmem:[%s4566_s3 + $0x178] sm:$0xff] }
 0x168   :  { %3226 = vmatprep.subr.bf16.mxu1 %v3651_v0 }
 0x16a   :  { %2793 = vmatmul.mubr.f32.gmra.mrb[4].mxu1 %v624_v25 }
 0x16b   :  { %3228 = vmatpush3.bf16.msra.mxu1 %v3227_v22  ;;  %2795 = vmatprep.mubr.msk.f32.mxu1 %vm3652_vm1, %v3653_v1 }
 0x16c   :  { %3229 = vmatprep.subr.bf16.mxu1 %v3651_v0 }
 0x16e   :  { %2796 = vmatmul.mubr.f32.gmra.mrb[6].mxu1 %v625_v29 }
 0x16f   :  { %3231 = vmatpush3.bf16.msra.mxu1 %v3230_v26  ;;  %2798 = vmatprep.mubr.msk.f32.mxu1 %vm3652_vm1, %v3653_v1  ;;  %v3272_v26 = vpack.c.bf16 %v2297_v21, %v2296_v20  ;;  %v1220_v20 = vld [vmem:[#allocation12 + $0x8] sm:$0xff] }
 0x170   :  { %3232 = vmatprep.subr.bf16.mxu1 %v3651_v0 }
 0x172   :  { %2799 = vmatmul.mubr.f32.gmra.mrb[8].mxu1 %v626_v33  ;;  %v2301_v33 = vld [vmem:[%s4566_s3 + $0xb8] sm:$0xff] }
 0x173   :  { %3234 = vmatpush3.bf16.msra.mxu1 %v3233_v30  ;;  %2833 = vmatprep.mubr.msk.f32.mxu1 %vm3652_vm1, %v3653_v1  ;;  %v3275_v30 = vpack.c.bf16 %v2299_v28, %v2298_v27  ;;  %v3278_v35 = vpack.c.bf16 %v2301_v33, %v2300_v32  ;;  %v1225_v28 = vld [vmem:[#allocation12 + $0x30] sm:$0xff] }
 0x174   :  { %3235 = vmatprep.subr.bf16.mxu1 %v3651_v0 }
 0x177   :  { %3237 = vmatpush3.bf16.msra.mxu1 %v3236_v34 }
 0x178   :  { %3238 = vmatprep.subr.bf16.mxu1 %v3651_v0 }
 0x17b   :  { %3240 = vmatpush3.bf16.msra.mxu1 %v3239_v37  ;;  %v2302_v37 = vld [vmem:[%s4566_s3 + $0xc0] sm:$0xff] }
 0x17c   :  { %3241 = vmatprep.subr.bf16.mxu1 %v3651_v0  ;;  %v3281_v39 = vpack.c.bf16 %v2303_v38, %v2302_v37 }
 0x17f   :  { %3243 = vmatpush3.bf16.msra.mxu1 %v3242_v40  ;;  %v2304_v40 = vld [vmem:[%s4566_s3 + $0xd0] sm:$0xff] }
 0x180   :  { %3316 = vmatprep.subr.bf16.mxu1 %v3651_v0 }
 0x182   :  { %2834 = vmatmul.mubr.f32.vlgmr.msra.gmra.mrb[0].mxu1 %v739_v41  ;;  %v2305_v41 = vld [vmem:[%s4566_s3 + $0xd8] sm:$0xff] }
 0x183   :  { %2836 = vmatprep.mubr.msk.f32.mxu1 %vm3652_vm1, %v3653_v1 }
 0x186   :  { %2837 = vmatmul.mubr.f32.gmra.mrb[2].mxu1 %v740_v42  ;;  %v3284_v42 = vpack.c.bf16 %v2305_v41, %v2304_v40 }
 0x187   :  { %2839 = vmatprep.mubr.msk.f32.mxu1 %vm3652_vm1, %v3653_v1 }
 0x18a   :  { %2840 = vmatmul.mubr.f32.gmra.mrb[4].mxu1 %v741_v43  ;;  %v2306_v43 = vld [vmem:[%s4566_s3 + $0xe0] sm:$0xff] }
 0x18b   :  { %2842 = vmatprep.mubr.msk.f32.mxu1 %vm3652_vm1, %v3653_v1 }
 0x18e   :  { %2843 = vmatmul.mubr.f32.gmra.mrb[6].mxu1 %v742_v44  ;;  %v2307_v44 = vld [vmem:[%s4566_s3 + $0xe8] sm:$0xff] }
 0x18f   :  { %2845 = vmatprep.mubr.msk.f32.mxu1 %vm3652_vm1, %v3653_v1  ;;  %v3287_v46 = vpack.c.bf16 %v2307_v44, %v2306_v43  ;;  %v1323_v43 = vld [vmem:[#allocation12 + $0x40] sm:$0xff]  ;;  %v1324_v44 = vld [vmem:[#allocation12 + $0x48] sm:$0xff] }
 0x192   :  { %2846 = vmatmul.mubr.f32.gmra.mrb[8].mxu1 %v743_v45 }
 0x193   :  { %2987 = vmatprep.mubr.msk.f32.mxu1 %vm3652_vm1, %v3653_v1 }
 0x255   :  { %v827_v3 = vpop.f32.mrb[0].mxu1 }
 0x256   :  { %v3429_v4 = vadd.f32 %v2260_v2, %v827_v3  ;;  %v2835_v5 = vpop.f32.mrb[1].mxu1  ;;  %v3302_v3 = vpack.c.bf16 %v2317_v63, %v2316_v62  ;;  %v1429_v63 = vld [vmem:[#allocation12 + $0x90] sm:$0xff] }
 0x257   :  { %v2319_v5 = vld [vmem:[%s4566_s3 + $0x148] sm:$0xff] }
 0x258   :  { %v865_v6 = vmax.f32 %v3429_v4, 0.0  ;;  %863 = vst [vmem:[#allocation14] sm:$0xff] %v3429_v4  ;;  %v2318_v4 = vld [vmem:[%s4566_s3 + $0x140] sm:$0xff] }
 0x259   :  { %v832_v7 = vpop.f32.mrb[2].mxu1 }
 0x25a   :  { %867 = vst [vmem:[#allocation3 + $0x1] sm:$0xff] %v865_v6  ;;  %v3430_v8 = vadd.f32 %v2260_v2, %v832_v7  ;;  %v2838_v9 = vpop.f32.mrb[3].mxu1  ;;  %v3305_v6 = vpack.c.bf16 %v2319_v5, %v2318_v4  ;;  %v2320_v7 = vld [vmem:[%s4566_s3 + $0x150] sm:$0xff]  ;;  %v1431_v5 = vld [vmem:[#allocation12 + $0xa0] sm:$0xff] }
 0x25c   :  { %v866_v10 = vmax.f32 %v3430_v8, 0.0  ;;  %864 = vst [vmem:[#allocation14 + $0x8] sm:$0xff] %v3430_v8  ;;  %v2321_v8 = vld [vmem:[%s4566_s3 + $0x158] sm:$0xff] }
 0x25d   :  { %v837_v11 = vpop.f32.mrb[4].mxu1  ;;  %v3308_v9 = vpack.c.bf16 %v2321_v8, %v2320_v7 }
 0x25e   :  { %868 = vst [vmem:[#allocation3 + $0x9] sm:$0xff] %v866_v10  ;;  %v3431_v12 = vadd.f32 %v2260_v2, %v837_v11  ;;  %v2841_v13 = vpop.f32.mrb[5].mxu1  ;;  %v2322_v10 = vld [vmem:[%s4566_s3 + $0x160] sm:$0xff]  ;;  %v2323_v11 = vld [vmem:[%s4566_s3 + $0x168] sm:$0xff] }
 0x25f   :  { %v2324_v13 = vld [vmem:[%s4566_s3 + $0x170] sm:$0xff] }
 0x260   :  { %858 = vst [vmem:[#allocation6 + $0x10] sm:$0xff] %v3431_v12  ;;  %v3311_v12 = vpack.c.bf16 %v2323_v11, %v2322_v10  ;;  %v3314_v15 = vpack.c.bf16 %v2325_v14, %v2324_v13  ;;  %v1434_v10 = vld [vmem:[#allocation12 + $0xb8] sm:$0xff] }
 0x261   :  { %v842_v16 = vpop.f32.mrb[6].mxu1 }
 0x262   :  { %v3432_v17 = vadd.f32 %v2260_v2, %v842_v16  ;;  %v2844_v18 = vpop.f32.mrb[7].mxu1 }
 0x264   :  { %859 = vst [vmem:[#allocation6 + $0x18] sm:$0xff] %v3432_v17 }
 0x265   :  { %v847_v22 = vpop.f32.mrb[8].mxu1  ;;  %v884_v23 = vld [vmem:[#allocation3] ss:$2 sm:$0xff]  ;;  %v989_v56 = vld [vmem:[#allocation3 + $0x1] ss:$2 sm:$0xff] }
 0x266   :  { %v3433_v24 = vadd.f32 %v2260_v2, %v847_v22  ;;  %v2847_v25 = vpop.f32.mrb[9].mxu1  ;;  %2881 = vmatmul.mubr.f32.vlgmr.msra.gmra.mrb[10].mxu0 %v884_v23  ;;  %v1095_v16 = vld [vmem:[#allocation3 + $0x2] ss:$2 sm:$0xff]  ;;  %v1222_v23 = vld [vmem:[#allocation12 + $0x18] sm:$0xff] }
 0x267   :  { %3270 = vmatpush3.bf16.msra.mxu0 %v3269_v19  ;;  %2883 = vmatprep.mubr.msk.f32.mxu0 %vm3652_vm1, %v3653_v1  ;;  %v1219_v19 = vld [vmem:[#allocation12] sm:$0xff]  ;;  %v1221_v22 = vld [vmem:[#allocation12 + $0x10] sm:$0xff] }
 0x268   :  { %860 = vst [vmem:[#allocation6 + $0x20] sm:$0x3] %v3433_v24  ;;  %3271 = vmatprep.subr.bf16.mxu0 %v3651_v0  ;;  %v3317_v21 = vpack.c.bf16 %v1220_v20, %v1219_v19  ;;  %v3320_v24 = vpack.c.bf16 %v1222_v23, %v1221_v22  ;;  %v1223_v25 = vld [vmem:[#allocation12 + $0x20] sm:$0xff]  ;;  %v2342_v22 = vld [vmem:[%s4568_s5 + $0x58] sm:$0xff] }
 0x269   :  { %v1569_v19 = vld [vmem:[%s4568_s5 + $0x8] sm:$0xff] }
 0x26a   :  { %3318 = vmatpush3.bf16.msra.mxu1 %v3317_v21  ;;  %v2341_v21 = vld [vmem:[%s4568_s5 + $0x50] sm:$0xff] }
 0x26b   :  { %v869_v29 = vld [vmem:[#allocation6 + $0x12] sm:$0xff]  ;;  %3273 = vmatpush3.bf16.msra.mxu0 %v3272_v26  ;;  %3319 = vmatprep.subr.bf16.mxu1 %v3651_v0  ;;  %v3372_v23 = vpack.c.bf16 %v2342_v22, %v2341_v21 }
 0x26c   :  { %v873_v31 = vmax.f32 %v869_v29, 0.0  ;;  %871 = vst [vmem:[#allocation14 + $0x10] sm:$0xff] %v869_v29  ;;  %3274 = vmatprep.subr.bf16.mxu0 %v3651_v0  ;;  %v1224_v26 = vld [vmem:[#allocation12 + $0x28] sm:$0xff]  ;;  %v1226_v29 = vld [vmem:[#allocation12 + $0x38] sm:$0xff] }
 0x26d   :  { %v3323_v27 = vpack.c.bf16 %v1224_v26, %v1223_v25  ;;  %v1571_v25 = vld [vmem:[%s4568_s5 + $0x18] sm:$0xff]  ;;  %v2364_v22 = vld [vmem:[%s4569_s6 + $0x30] sm:$0xff] }
 0x26e   :  { %875 = vst [vmem:[#allocation3 + $0x13] sm:$0xff] %v873_v31  ;;  %3321 = vmatpush3.bf16.msra.mxu1 %v3320_v24  ;;  %v2293_v31 = vld [vmem:[%s4572_s9] ss:$0 sm:$0xff]  ;;  %v1570_v24 = vld [vmem:[%s4568_s5 + $0x10] sm:$0xff] }
 0x26f   :  { %v870_v34 = vld [vmem:[#allocation6 + $0x1a] sm:$0xff]  ;;  %3276 = vmatpush3.bf16.msra.mxu0 %v3275_v30  ;;  %3322 = vmatprep.subr.bf16.mxu1 %v3651_v0  ;;  %v3326_v30 = vpack.c.bf16 %v1226_v29, %v1225_v28  ;;  %v3356_v26 = vpack.c.bf16 %v1571_v25, %v1570_v24  ;;  %v2344_v28 = vld [vmem:[%s4568_s5 + $0x68] sm:$0xff]  ;;  %v2368_v25 = vld [vmem:[%s4569_s6 + $0x40] sm:$0xff] }
 0x270   :  { %v874_v36 = vmax.f32 %v870_v34, 0.0  ;;  %872 = vst [vmem:[#allocation14 + $0x18] sm:$0xff] %v870_v34  ;;  %3277 = vmatprep.subr.bf16.mxu0 %v3651_v0 }
 0x272   :  { %876 = vst [vmem:[#allocation3 + $0x1b] sm:$0xff] %v874_v36  ;;  %3324 = vmatpush3.bf16.msra.mxu1 %v3323_v27  ;;  %v2343_v27 = vld [vmem:[%s4568_s5 + $0x60] sm:$0xff] }
 0x273   :  { %3279 = vmatpush3.bf16.msra.mxu0 %v3278_v35  ;;  %3325 = vmatprep.subr.bf16.mxu1 %v3651_v0  ;;  %v3376_v29 = vpack.c.bf16 %v2344_v28, %v2343_v27 }
 0x274   :  { %3280 = vmatprep.subr.bf16.mxu0 %v3651_v0 }
 0x276   :  { %3327 = vmatpush3.bf16.msra.mxu1 %v3326_v30  ;;  %v1572_v30 = vld [vmem:[%s4568_s5 + $0x20] sm:$0xff] }
 0x277   :  { %3282 = vmatpush3.bf16.msra.mxu0 %v3281_v39  ;;  %3328 = vmatprep.subr.bf16.mxu1 %v3651_v0 }
 0x278   :  { %3283 = vmatprep.subr.bf16.mxu0 %v3651_v0 }
 0x279   :  { %v886_v45 = vld [vmem:[#allocation3 + $0x10] ss:$2 sm:$0xff]  ;;  %v888_v49 = vld [vmem:[#allocation3 + $0x20] ss:$2 sm:$0x1] }
 0x27a   :  { %2884 = vmatmul.mubr.f32.gmra.mrb[12].mxu0 %v886_v45  ;;  %v991_v60 = vld [vmem:[#allocation3 + $0x11] ss:$2 sm:$0xff]  ;;  %v993_v2 = vld [vmem:[#allocation3 + $0x21] ss:$2 sm:$0x1] }
 0x27b   :  { %2886 = vmatprep.mubr.msk.f32.mxu0 %vm3652_vm1, %v3653_v1  ;;  %3285 = vmatpush3.bf16.msra.mxu0 %v3284_v42  ;;  %v1097_v17 = vld [vmem:[#allocation3 + $0x12] ss:$2 sm:$0xff]  ;;  %v1099_v18 = vld [vmem:[#allocation3 + $0x22] ss:$2 sm:$0x1] }
 0x27c   :  { %3286 = vmatprep.subr.bf16.mxu0 %v3651_v0 }
 0x27e   :  { %2887 = vmatmul.mubr.f32.gmra.mrb[14].mxu0 %v888_v49  ;;  %v1326_v49 = vld [vmem:[#allocation12 + $0x58] sm:$0xff] }
 0x27f   :  { %3288 = vmatpush3.bf16.msra.mxu0 %v3287_v46  ;;  %2921 = vmatprep.mubr.msk.f32.mxu0 %vm3652_vm1, %v3653_v1  ;;  %v3329_v46 = vpack.c.bf16 %v1324_v44, %v1323_v43  ;;  %v3332_v51 = vpack.c.bf16 %v1326_v49, %v1325_v48 }
 0x280   :  { %3289 = vmatprep.subr.bf16.mxu0 %v3651_v0 }
 0x283   :  { %3291 = vmatpush3.bf16.msra.mxu0 %v3290_v50 }
 0x284   :  { %3292 = vmatprep.subr.bf16.mxu0 %v3651_v0 }
 0x286   :  { %2922 = vmatmul.mubr.f32.vlgmr.msra.gmra.mrb[10].mxu0 %v989_v56  ;;  %v1330_v56 = vld [vmem:[#allocation12 + $0x78] sm:$0xff] }
 0x287   :  { %3294 = vmatpush3.bf16.msra.mxu0 %v3293_v53  ;;  %2924 = vmatprep.mubr.msk.f32.mxu0 %vm3652_vm1, %v3653_v1  ;;  %v1328_v53 = vld [vmem:[#allocation12 + $0x68] sm:$0xff]  ;;  %v3338_v58 = vpack.c.bf16 %v1330_v56, %v1329_v55 }
 0x288   :  { %3295 = vmatprep.subr.bf16.mxu0 %v3651_v0  ;;  %v3335_v54 = vpack.c.bf16 %v1328_v53, %v1327_v52 }
 0x28a   :  { %2925 = vmatmul.mubr.f32.gmra.mrb[12].mxu0 %v991_v60  ;;  %v1428_v60 = vld [vmem:[#allocation12 + $0x88] sm:$0xff] }
 0x28b   :  { %3297 = vmatpush3.bf16.msra.mxu0 %v3296_v57  ;;  %2927 = vmatprep.mubr.msk.f32.mxu0 %vm3652_vm1, %v3653_v1  ;;  %v3341_v62 = vpack.c.bf16 %v1428_v60, %v1427_v59  ;;  %v2351_v60 = vld [vmem:[%s4568_s5 + $0x90] sm:$0xff] }
 0x28c   :  { %3298 = vmatprep.subr.bf16.mxu0 %v3651_v0 }
 0x28e   :  { %2928 = vmatmul.mubr.f32.gmra.mrb[14].mxu0 %v993_v2  ;;  %v1430_v2 = vld [vmem:[#allocation12 + $0x98] sm:$0xff] }
 0x28f   :  { %3300 = vmatpush3.bf16.msra.mxu0 %v3299_v61  ;;  %2962 = vmatprep.mubr.msk.f32.mxu0 %vm3652_vm1, %v3653_v1  ;;  %v3344_v4 = vpack.c.bf16 %v1430_v2, %v1429_v63 }
 0x290   :  { %3301 = vmatprep.subr.bf16.mxu0 %v3651_v0 }
 0x293   :  { %3303 = vmatpush3.bf16.msra.mxu0 %v3302_v3 }
 0x294   :  { %3304 = vmatprep.subr.bf16.mxu0 %v3651_v0 }
 0x297   :  { %3306 = vmatpush3.bf16.msra.mxu0 %v3305_v6  ;;  %v1432_v6 = vld [vmem:[#allocation12 + $0xa8] sm:$0xff] }
 0x298   :  { %3307 = vmatprep.subr.bf16.mxu0 %v3651_v0  ;;  %v3347_v8 = vpack.c.bf16 %v1432_v6, %v1431_v5 }
 0x29b   :  { %3309 = vmatpush3.bf16.msra.mxu0 %v3308_v9  ;;  %v1433_v9 = vld [vmem:[#allocation12 + $0xb0] sm:$0xff] }
 0x29c   :  { %3310 = vmatprep.subr.bf16.mxu0 %v3651_v0 }
 0x29f   :  { %3312 = vmatpush3.bf16.msra.mxu0 %v3311_v12  ;;  %v3350_v12 = vpack.c.bf16 %v1434_v10, %v1433_v9  ;;  %v2355_v9 = vld [vmem:[%s4568_s5 + $0xb0] sm:$0xff]  ;;  %v2356_v10 = vld [vmem:[%s4568_s5 + $0xb8] sm:$0xff] }
 0x2a0   :  { %3313 = vmatprep.subr.bf16.mxu0 %v3651_v0 }
 0x2a3   :  { %3315 = vmatpush3.bf16.msra.mxu0 %v3314_v15 }
 0x2a6   :  { %2963 = vmatmul.mubr.f32.vlgmr.msra.gmra.mrb[10].mxu0 %v1095_v16  ;;  %v2340_v16 = vld [vmem:[%s4568_s5 + $0x48] sm:$0xff] }
 0x2a7   :  { %2965 = vmatprep.mubr.msk.f32.mxu0 %vm3652_vm1, %v3653_v1 }
 0x2aa   :  { %2966 = vmatmul.mubr.f32.gmra.mrb[12].mxu0 %v1097_v17 }
 0x2ab   :  { %2968 = vmatprep.mubr.msk.f32.mxu0 %vm3652_vm1, %v3653_v1 }
 0x2ae   :  { %2969 = vmatmul.mubr.f32.gmra.mrb[14].mxu0 %v1099_v18  ;;  %v1568_v18 = vld [vmem:[%s4568_s5] sm:$0xff] }
 0x2af   :  { %v3352_v20 = vpack.c.bf16 %v1569_v19, %v1568_v18  ;;  %v1872_v18 = vld [vmem:[%s4569_s6 + $0x10] sm:$0xff]  ;;  %v1873_v19 = vld [vmem:[%s4569_s6 + $0x18] sm:$0xff] }
 0x2b0   :  { %v3404_v21 = vpack.c.bf16 %v1873_v19, %v1872_v18 }
 0x2b1   :  { %3353 = vmatprep.subr.bf16.mxu0 %v3352_v20 }
 0x2b2   :  { %3355 = vmatpush3.bf16.msra.mxu0 %v3352_v20 }
 0x2b3   :  { %3357 = vmatprep.subr.bf16.mxu0 %v3356_v26 }
 0x2b6   :  { %3359 = vmatpush3.bf16.msra.mxu0 %v3356_v26  ;;  %v2369_v26 = vld [vmem:[%s4569_s6 + $0x48] sm:$0xff] }
 0x2b7   :  { %v3416_v27 = vpack.c.bf16 %v2369_v26, %v2368_v25 }
 0x379   :  { %v1183_v32 = vpop.f32.mrb[10].mxu0 }
 0x37a   :  { %v3434_v33 = vadd.f32 %v2293_v31, %v1183_v32  ;;  %v2964_v34 = vpop.f32.mrb[11].mxu0 }
 0x37b   :  { %v2346_v34 = vld [vmem:[%s4568_s5 + $0x78] sm:$0xff] }
 0x37c   :  { %1200 = vst.msk [vmem:[#allocation7] sm:$0xff] %vm97_vm2, %v3434_v33  ;;  %v2345_v33 = vld [vmem:[%s4568_s5 + $0x70] sm:$0xff] }
 0x37d   :  { %v1188_v35 = vpop.f32.mrb[12].mxu0 }
 0x37e   :  { %v3435_v36 = vadd.f32 %v2293_v31, %v1188_v35  ;;  %v2967_v37 = vpop.f32.mrb[13].mxu0  ;;  %v1574_v35 = vld [vmem:[%s4568_s5 + $0x30] sm:$0xff] }
 0x37f   :  { %v1575_v37 = vld [vmem:[%s4568_s5 + $0x38] sm:$0xff] }
 0x380   :  { %1201 = vst.msk [vmem:[#allocation7 + $0x8] sm:$0xff] %vm97_vm2, %v3435_v36  ;;  %v3380_v36 = vpack.c.bf16 %v2346_v34, %v2345_v33 }
 0x381   :  { %v1193_v38 = vpop.f32.mrb[14].mxu0 }
 0x382   :  { %v3436_v39 = vadd.f32 %v2293_v31, %v1193_v38  ;;  %v2970_v40 = vpop.f32.mrb[15].mxu0  ;;  %v1573_v31 = vld [vmem:[%s4568_s5 + $0x28] sm:$0xff]  ;;  %v3364_v38 = vpack.c.bf16 %v1575_v37, %v1574_v35 }
 0x383   :  { %v1203_v41 = vld [vmem:[#allocation7] sm:$0xff]  ;;  %v3360_v32 = vpack.c.bf16 %v1573_v31, %v1572_v30  ;;  %v2350_v40 = vld [vmem:[%s4568_s5 + $0x88] sm:$0xff] }
 0x384   :  { %v1204_v42 = vmax.f32 %v1203_v41, 0.0  ;;  %1202 = vst.msk [vmem:[#allocation7 + $0x10] sm:$0x1] %vm77_vm0, %v3436_v39  ;;  %v2349_v39 = vld [vmem:[%s4568_s5 + $0x80] sm:$0xff] }
 0x385   :  { %3361 = vmatprep.subr.bf16.mxu0 %v3360_v32  ;;  %v3384_v41 = vpack.c.bf16 %v2350_v40, %v2349_v39  ;;  %v2336_v30 = vld [vmem:[%s4574_s11] ss:$0 sm:$0xff] }
 0x386   :  { %1205 = vst.msk [vmem:[#allocation4 + $0x1] sm:$0xff] %vm97_vm2, %v1204_v42  ;;  %3363 = vmatpush3.bf16.msra.mxu0 %v3360_v32  ;;  %v2326_v42 = vld [vmem:[%s4573_s10] ss:$0 sm:$0xff]  ;;  %s3654_s10 = smov 64  }
 0x387   :  { %3365 = vmatprep.subr.bf16.mxu0 %v3364_v38 }
 0x38a   :  { %3367 = vmatpush3.bf16.msra.mxu0 %v3364_v38 }
 0x38b   :  { %v1206_v45 = vld [vmem:[#allocation7 + $0x9] sm:$0xff] }
 0x38c   :  { %v1207_v47 = vmax.f32 %v1206_v45, 0.0 }
 0x38d   :  { %v1216_v50 = vld [vmem:[#allocation4] sm:$0xff] }
 0x38e   :  { %1208 = vst.msk [vmem:[#allocation4 + $0xb] sm:$0xff] %vm97_vm2, %v1207_v47  ;;  %2988 = vmatmul.mubr.msk.f32.vlgmr.msra.gmra.mrb[10].mxu1 %vm97_vm2, %v1216_v50  ;;  %v1319_v3 = vld [vmem:[#allocation4 + $0x1] sm:$0xff] }
 0x38f   :  { %3330 = vmatpush3.bf16.msra.mxu1 %v3329_v46  ;;  %2990 = vmatprep.mubr.msk.f32.mxu1 %vm3652_vm1, %v3653_v1  ;;  %v1423_v13 = vld [vmem:[#allocation4 + $0x2] sm:$0xff] }
 0x390   :  { %3331 = vmatprep.subr.bf16.mxu1 %v3651_v0 }
 0x393   :  { %3333 = vmatpush3.bf16.msra.mxu1 %v3332_v51 }
 0x394   :  { %3334 = vmatprep.subr.bf16.mxu1 %v3651_v0 }
 0x395   :  { %v1217_v57 = vld [vmem:[#allocation4 + $0x8] sm:$0xff]  ;;  %v1218_v61 = vld [vmem:[#allocation4 + $0x10] sm:$0x3]  ;;  %v1425_v15 = vld [vmem:[#allocation4 + $0x12] sm:$0x3] }
 0x396   :  { %2991 = vmatmul.mubr.msk.f32.gmra.mrb[12].mxu1 %vm97_vm2, %v1217_v57  ;;  %v1320_v7 = vld [vmem:[#allocation4 + $0x9] sm:$0xff]  ;;  %v1321_v11 = vld [vmem:[#allocation4 + $0x11] sm:$0x3] }
 0x397   :  { %3336 = vmatpush3.bf16.msra.mxu1 %v3335_v54  ;;  %2993 = vmatprep.mubr.msk.f32.mxu1 %vm3652_vm1, %v3653_v1  ;;  %v1424_v14 = vld [vmem:[#allocation4 + $0xa] sm:$0xff] }
 0x398   :  { %3337 = vmatprep.subr.bf16.mxu1 %v3651_v0 }
 0x39a   :  { %2994 = vmatmul.mubr.msk.f32.gmra.mrb[14].mxu1 %vm97_vm2, %v1218_v61  ;;  %v2352_v61 = vld [vmem:[%s4568_s5 + $0x98] sm:$0xff] }
 0x39b   :  { %3339 = vmatpush3.bf16.msra.mxu1 %v3338_v58  ;;  %3012 = vmatprep.mubr.msk.f32.mxu1 %vm3652_vm1, %v3653_v1 }
 0x39c   :  { %3340 = vmatprep.subr.bf16.mxu1 %v3651_v0 }
 0x39e   :  { %3013 = vmatmul.mubr.msk.f32.vlgmr.msra.gmra.mrb[10].mxu1 %vm97_vm2, %v1319_v3  ;;  %v3388_v3 = vpack.c.bf16 %v2352_v61, %v2351_v60 }
 0x39f   :  { %3342 = vmatpush3.bf16.msra.mxu1 %v3341_v62  ;;  %3015 = vmatprep.mubr.msk.f32.mxu1 %vm3652_vm1, %v3653_v1  ;;  %v2353_v62 = vld [vmem:[%s4568_s5 + $0xa0] sm:$0xff] }
 0x3a0   :  { %3343 = vmatprep.subr.bf16.mxu1 %v3651_v0 }
 0x3a2   :  { %3016 = vmatmul.mubr.msk.f32.gmra.mrb[12].mxu1 %vm97_vm2, %v1320_v7 }
 0x3a3   :  { %3345 = vmatpush3.bf16.msra.mxu1 %v3344_v4  ;;  %3018 = vmatprep.mubr.msk.f32.mxu1 %vm3652_vm1, %v3653_v1  ;;  %v2354_v4 = vld [vmem:[%s4568_s5 + $0xa8] sm:$0xff] }
 0x3a4   :  { %3346 = vmatprep.subr.bf16.mxu1 %v3651_v0 }
 0x3a6   :  { %3019 = vmatmul.mubr.msk.f32.gmra.mrb[14].mxu1 %vm97_vm2, %v1321_v11  ;;  %v3396_v11 = vpack.c.bf16 %v2356_v10, %v2355_v9 }
 0x3a7   :  { %3348 = vmatpush3.bf16.msra.mxu1 %v3347_v8  ;;  %3037 = vmatprep.mubr.msk.f32.mxu1 %vm3652_vm1, %v3653_v1  ;;  %v3392_v8 = vpack.c.bf16 %v2354_v4, %v2353_v62 }
 0x3a8   :  { %3349 = vmatprep.subr.bf16.mxu1 %v3651_v0  ;;  %v2339_v0 = vld [vmem:[%s4568_s5 + $0x40] sm:$0xff] }
 0x3a9   :  { %v3368_v17 = vpack.c.bf16 %v2340_v16, %v2339_v0  ;;  %v1871_v0 = vld [vmem:[%s4569_s6 + $0x8] sm:$0xff]  ;;  %v2362_v16 = vld [vmem:[%s4569_s6 + $0x20] sm:$0xff] }
 0x3ab   :  { %3351 = vmatpush3.bf16.msra.mxu1 %v3350_v12 }
 0x3ac   :  { %3369 = vmatprep.subr.bf16.mxu1 %v3368_v17 }
 0x3ae   :  { %3038 = vmatmul.mubr.msk.f32.vlgmr.msra.gmra.mrb[10].mxu1 %vm97_vm2, %v1423_v13 }
 0x3af   :  { %3040 = vmatprep.mubr.msk.f32.mxu1 %vm3652_vm1, %v3653_v1  ;;  %3371 = vmatpush3.bf16.msra.mxu1 %v3368_v17 }
 0x3b0   :  { %3373 = vmatprep.subr.bf16.mxu1 %v3372_v23 }
 0x3b2   :  { %3041 = vmatmul.mubr.msk.f32.gmra.mrb[12].mxu1 %vm97_vm2, %v1424_v14 }
 0x3b3   :  { %3043 = vmatprep.mubr.msk.f32.mxu1 %vm3652_vm1, %v3653_v1  ;;  %3375 = vmatpush3.bf16.msra.mxu1 %v3372_v23  ;;  %v2363_v1 = vld [vmem:[%s4569_s6 + $0x28] sm:$0xff]  ;;  %v2365_v23 = vld [vmem:[%s4569_s6 + $0x38] sm:$0xff] }
 0x3b4   :  { %3377 = vmatprep.subr.bf16.mxu1 %v3376_v29  ;;  %v3408_v20 = vpack.c.bf16 %v2363_v1, %v2362_v16  ;;  %v3412_v24 = vpack.c.bf16 %v2365_v23, %v2364_v22 }
 0x3b6   :  { %3044 = vmatmul.mubr.msk.f32.gmra.mrb[14].mxu1 %vm97_vm2, %v1425_v15  ;;  %v1870_v15 = vld [vmem:[%s4569_s6] sm:$0xff]  ;;  %3409 = vmatprep.subr.bf16.mxu0 %v3408_v20 }
 0x3b7   :  { %3379 = vmatpush3.bf16.msra.mxu1 %v3376_v29  ;;  %v3400_v17 = vpack.c.bf16 %v1871_v0, %v1870_v15 }
 0x3b8   :  { %3381 = vmatprep.subr.bf16.mxu1 %v3380_v36 }
 0x3bb   :  { %3383 = vmatpush3.bf16.msra.mxu1 %v3380_v36 }
 0x3bc   :  { %3385 = vmatprep.subr.bf16.mxu1 %v3384_v41 }
 0x481   :  { %v1510_v43 = vpop.f32.mrb[10].mxu1 }
 0x482   :  { %v3437_v44 = vadd.f32 %v2326_v42, %v1510_v43  ;;  %v3039_v45 = vpop.f32.mrb[11].mxu1 }
 0x484   :  { %1527 = vst.msk [vmem:[#allocation7] sm:$0xff] %vm97_vm2, %v3437_v44 }
 0x485   :  { %v1515_v46 = vpop.f32.mrb[12].mxu1 }
 0x486   :  { %v3438_v47 = vadd.f32 %v2326_v42, %v1515_v46  ;;  %v3042_v48 = vpop.f32.mrb[13].mxu1 }
 0x488   :  { %1528 = vst.msk [vmem:[#allocation7 + $0x8] sm:$0xff] %vm97_vm2, %v3438_v47 }
 0x489   :  { %v1520_v49 = vpop.f32.mrb[14].mxu1 }
 0x48a   :  { %v3439_v50 = vadd.f32 %v2326_v42, %v1520_v49  ;;  %v3045_v51 = vpop.f32.mrb[15].mxu1  ;;  %v2371_v42 = vld [vmem:[%s4569_s6 + $0x58] sm:$0xff] }
 0x48b   :  { %v1531_v52 = vld [vmem:[#allocation7] sm:$0xff] }
 0x48c   :  { %v1541_v53 = vld [vmem:[#allocation7 + $0x1] ss:$2 sm:$0xf]  ;;  %v1532_v54 = vmax.f32 %v1531_v52, 0.0  ;;  %1530 = vst.msk [vmem:[#allocation7 + $0x10] sm:$0x3] %vm1529_vm3, %v3439_v50 }
 0x48d   :  { %1543 = vrot.lane.b32.xlu1 %v1541_v53, %s3654_s10  ;;  %v1537_v55 = vld [vmem:[#allocation7] ss:$2 sm:$0xf] }
 0x48e   :  { %1539 = vst.msk [vmem:[#allocation15] sm:$0xf] %vm1538_vm4, %v1537_v55  ;;  %v2359_v52 = vld [vmem:[%s4575_s12] ss:$0 sm:$0xff]  ;;  %s3573_s12 = scalar_lea.vmem %s2202_s1, 128 }
 0x48f   :  { %1533 = vst.msk [vmem:[#allocation4 + $0x1] sm:$0xff] %vm97_vm2, %v1532_v54  ;;  %p3574_p2 = scmp.ne.s32.totalorder %s2202_s1, %s3573_s12  ;;  %p3579_p4 = scmp.lt.s32.totalorder %s3573_s12, %s3573_s12 }
 0x491   :  { %p3580_p5 = por %p3579_p4, %p3578_p3 }
 0x493   :  { %v1534_v56 = vld [vmem:[#allocation7 + $0xa] sm:$0xff]  ;;  %p3581_p6 = pnand %p3580_p5, %p3574_p2 }
 0x494   :  { %v1552_v57 = vld [vmem:[#allocation7 + $0xb] ss:$2 sm:$0xf]  ;;  %v1535_v58 = vmax.f32 %v1534_v56, 0.0 }
 0x495   :  { %1554 = vrot.lane.b32.xlu1 %v1552_v57, %s3654_s10  ;;  %v1549_v59 = vld [vmem:[#allocation7 + $0xa] ss:$2 sm:$0xf] }
 0x496   :  { %1550 = vst.msk [vmem:[#allocation15 + $0x4] sm:$0xf] %vm1538_vm4, %v1549_v59 }
 0x497   :  { %1536 = vst.msk [vmem:[#allocation4 + $0xb] sm:$0xff] %vm97_vm2, %v1535_v58 }
 0x49e   :  { %v1565_v63 = vld [vmem:[#allocation4] ss:$2 sm:$0xff]  ;;  %v1660_v2 = vld [vmem:[#allocation4 + $0x1] ss:$2 sm:$0xff] }
 0x49f   :  { %3062 = vmatprep.mubr.msk.f32.mxu0 %vm97_vm2, %v1565_v63  ;;  %3081 = vmatprep.mubr.msk.f32.mxu1 %vm97_vm2, %v1660_v2  ;;  %v1567_v5 = vld [vmem:[#allocation4 + $0x10] ss:$2 sm:$0x1]  ;;  %v1662_v6 = vld [vmem:[#allocation4 + $0x11] ss:$2 sm:$0x1] }
 0x4a0   :  { %3063 = vmatmul.mubr.msk.f32.vlgmr.msra.gmra.mrb[16].mxu0 %vm97_vm2, %v1567_v5  ;;  %3082 = vmatmul.mubr.msk.f32.vlgmr.msra.gmra.mrb[16].mxu1 %vm97_vm2, %v1662_v6  ;;  %v1756_v7 = vld [vmem:[#allocation4 + $0x2] ss:$2 sm:$0xff]  ;;  %v1758_v12 = vld [vmem:[#allocation4 + $0x12] ss:$2 sm:$0x1] }
 0x4a1   :  { %3387 = vmatpush3.bf16.msra.mxu1 %v3384_v41  ;;  %3100 = vmatprep.mubr.msk.f32.mxu1 %vm97_vm2, %v1756_v7  ;;  %v2370_v41 = vld [vmem:[%s4569_s6 + $0x50] sm:$0xff] }
 0x4a2   :  { %3389 = vmatprep.subr.bf16.mxu1 %v3388_v3  ;;  %3411 = vmatpush3.bf16.msra.mxu0 %v3408_v20  ;;  %v3420_v46 = vpack.c.bf16 %v2371_v42, %v2370_v41 }
 0x4a3   :  { %3413 = vmatprep.subr.bf16.mxu0 %v3412_v24 }
 0x4a5   :  { %3391 = vmatpush3.bf16.msra.mxu1 %v3388_v3 }
 0x4a6   :  { %3393 = vmatprep.subr.bf16.mxu1 %v3392_v8  ;;  %3415 = vmatpush3.bf16.msra.mxu0 %v3412_v24 }
 0x4a7   :  { %3417 = vmatprep.subr.bf16.mxu0 %v3416_v27 }
 0x4a9   :  { %3395 = vmatpush3.bf16.msra.mxu1 %v3392_v8 }
 0x4aa   :  { %3397 = vmatprep.subr.bf16.mxu1 %v3396_v11 }
 0x4ad   :  { %3399 = vmatpush3.bf16.msra.mxu1 %v3396_v11 }
 0x4ae   :  { %3401 = vmatprep.subr.bf16.mxu1 %v3400_v17 }
 0x4b0   :  { %3101 = vmatmul.mubr.msk.f32.vlgmr.msra.gmra.mrb[16].mxu1 %vm97_vm2, %v1758_v12 }
 0x4b1   :  { %3403 = vmatpush3.bf16.msra.mxu1 %v3400_v17 }
 0x4b2   :  { %3405 = vmatprep.subr.bf16.mxu1 %v3404_v21 }
 0x4b5   :  { %3407 = vmatpush3.bf16.msra.mxu1 %v3404_v21 }
 0x4ff   :  { %v1544_v13 = vpop.permute.xlu1 %1543 }
 0x500   :  { %1547 = vst.msk [vmem:[#allocation15] sm:$0xf] %vm1546_vm6, %v1544_v13 }
 0x507   :  { %v1555_v14 = vpop.permute.xlu1 %1554 }
 0x508   :  { %1557 = vst.msk [vmem:[#allocation15 + $0x4] sm:$0xf] %vm1546_vm6, %v1555_v14 }
 0x573   :  { %v3064_v28 = vpop.f32.mrb[16].mxu0 }
 0x574   :  { %v1648_v29 = vpop.f32.mrb[17].mxu0  ;;  %v1658_v31 = vadd.f32 %v3064_v28, %v2336_v30 }
 0x575   :  { %v1657_v32 = vadd.f32 %v2336_v30, %v1648_v29 }
 0x583   :  { %v3102_v33 = vpop.f32.mrb[16].mxu1 }
 0x584   :  { %v3441_v34 = vadd.f32 %v3102_v33, %v1658_v31  ;;  %v1840_v35 = vpop.f32.mrb[17].mxu1 }
 0x585   :  { %v3443_v36 = vadd.f32 %v1840_v35, %v1657_v32 }
 0x586   :  { %1853 = vst.msk [vmem:[#allocation8 + $0x8] sm:$0x1] %vm90_vm5, %v3441_v34 }
 0x587   :  { %1852 = vst.msk [vmem:[#allocation8] sm:$0xff] %vm1851_vm7, %v3443_v36 }
 0x58e   :  { %v1854_v37 = vld [vmem:[#allocation8] sm:$0xf]  ;;  %v1858_v38 = vld [vmem:[#allocation8 + $0x5] sm:$0xf] }
 0x58f   :  { %v1855_v39 = vmax.f32 %v1854_v37, 0.0  ;;  %v1859_v40 = vmax.f32 %v1858_v38, 0.0 }
 0x591   :  { %1857 = vst.msk [vmem:[#allocation5 + $0x1] sm:$0xf] %vm1856_vm8, %v1855_v39  ;;  %1860 = vst.msk [vmem:[#allocation5 + $0x7] sm:$0xf] %vm1856_vm8, %v1859_v40 }
 0x598   :  { %v1868_v43 = vld [vmem:[#allocation5] sm:$0xff]  ;;  %v1869_v45 = vld [vmem:[#allocation5 + $0x8] sm:$0x3]  ;;  %v2048_v49 = vld [vmem:[#allocation5 + $0xa] sm:$0x3] }
 0x599   :  { %v1957_v44 = vld [vmem:[#allocation5 + $0x1] sm:$0xff]  ;;  %3111 = vmatprep.mubr.msk.f32.mxu1 %vm1851_vm7, %v1868_v43  ;;  %v1958_v47 = vld [vmem:[#allocation5 + $0x9] sm:$0x3] }
 0x59a   :  { %3122 = vmatprep.mubr.msk.f32.mxu0 %vm1851_vm7, %v1957_v44  ;;  %3112 = vmatmul.mubr.msk.f32.vlgmr.msra.gmra.mrb[18].mxu1 %vm1851_vm7, %v1869_v45  ;;  %v2047_v48 = vld [vmem:[#allocation5 + $0x2] sm:$0xff] }
 0x59b   :  { %3123 = vmatmul.mubr.msk.f32.vlgmr.msra.gmra.mrb[18].mxu0 %vm1851_vm7, %v1958_v47 }
 0x59c   :  { %3419 = vmatpush3.bf16.msra.mxu0 %v3416_v27  ;;  %3133 = vmatprep.mubr.msk.f32.mxu0 %vm1851_vm7, %v2047_v48 }
 0x59d   :  { %3421 = vmatprep.subr.bf16.mxu0 %v3420_v46 }
 0x5a0   :  { %3423 = vmatpush3.bf16.msra.mxu0 %v3420_v46 }
 0x5a3   :  { %3134 = vmatmul.mubr.msk.f32.vlgmr.msra.gmra.mrb[18].mxu0 %vm1851_vm7, %v2048_v49 }
 0x66d   :  { %v3113_v50 = vpop.f32.mrb[18].mxu1 }
 0x66e   :  { %v1946_v51 = vpop.f32.mrb[19].mxu1  ;;  %v1956_v53 = vadd.f32 %v3113_v50, %v2359_v52 }
 0x66f   :  { %v1955_v54 = vadd.f32 %v2359_v52, %v1946_v51 }
 0x676   :  { %v3135_v55 = vpop.f32.mrb[18].mxu0 }
 0x677   :  { %v3445_v56 = vadd.f32 %v3135_v55, %v1956_v53  ;;  %v2126_v57 = vpop.f32.mrb[19].mxu0 }
 0x678   :  { %v3447_v58 = vadd.f32 %v2126_v57, %v1955_v54 }
 0x679   :  { %2139 = vst.msk [vmem:[#allocation8 + $0x8] sm:$0x3] %vm2138_vm9, %v3445_v56 }
 0x67a   :  { %2137 = vst.msk [vmem:[#allocation8] sm:$0xff] %vm1851_vm7, %v3447_v58 }
 0x680   :  { %v2171_v59 = vld [vmem:[#allocation8 + $0x8] sm:$0x1] }
 0x681   :  { %2173 = vrot.lane.b32.xlu1 %v2171_v59, %s3654_s10  ;;  %v2142_v60 = vld [vmem:[#allocation8 + $0x1] sm:$0x1]  ;;  %v2140_v61 = vld [vmem:[#allocation8] sm:$0x1]  ;;  %v2163_v62 = vld [vmem:[#allocation8 + $0x6] sm:$0x1] }
 0x682   :  { %2144 = vrot.lane.b32.xlu0 %v2142_v60, %s3656_s4  ;;  %2141 = vst.msk [vmem:[#allocation17] sm:$0x1] %vm90_vm5, %v2140_v61  ;;  %2164 = vst.msk [vmem:[#allocation17 + $0x1] sm:$0x1] %vm90_vm5, %v2163_v62 }
 0x683   :  { %3584 = shalt.err (!%p3581_p6)
}
 0x684   :  { %s3585_s16 = scalar_lea.hbm %s4577_s14, 128 }
 0x685   :  { %p3586_p7 = scmp.ne.s32.totalorder %s4577_s14, %s3585_s16  ;;  %p3589_p8 = scmp.lt.u32.totalorder %s3585_s16, %s4577_s14 }
 0x687   :  { %p3591_p9 = pnand %p3589_p8, %p3586_p7 }
 0x689   :  { %3594 = shalt.err (!%p3591_p9)
}
 0x68a   :  { %2204 = dma.vmem_to_hbm [thread:$0]  %s2202_s1, 128, %s4577_s14, [#allocation16]   ;;  %v2177_v63 = vld [vmem:[#allocation8 + $0x9] sm:$0x1]  ;;  %v2165_v2 = vld [vmem:[#allocation8 + $0x7] sm:$0x1] }
 0x68b   :  { %s3657_s22 = smov [#allocation14]   ;;  %s3658_s2 = smov 96   ;;  %2167 = vrot.lane.b32.xlu0 %v2165_v2, %s3656_s4 }
 0x68c   :  { %s2188_s23 = sshll.u32 %s3657_s22, 4  ;;  %2179 = vrot.lane.b32.xlu1 %v2177_v63, %s3658_s2  ;;  %s2189_s23 = int_to_ptr.vmem [resolvable:$true] %s2188_s23 }
 0x68d   :  { %s3595_s24 = scalar_lea.vmem %s2189_s23, 512  ;;  %p3600_p11 = scmp.lt.s32.totalorder %s2189_s23, %s2189_s23 }
 0x68e   :  { %p3596_p10 = scmp.ne.s32.totalorder %s2189_s23, %s3595_s24  ;;  %p3601_p12 = scmp.lt.s32.totalorder %s3595_s24, %s3595_s24 }
 0x690   :  { %p3602_p13 = por %p3601_p12, %p3600_p11 }
 0x692   :  { %p3603_p0 = pnand %p3602_p13, %p3596_p10 }
 0x694   :  { %3606 = shalt.err (!%p3603_p0)
}
 0x695   :  { %s3607_s5 = scalar_lea.hbm %s4576_s13, 512 }
 0x696   :  { %p3608_p1 = scmp.ne.s32.totalorder %s4576_s13, %s3607_s5  ;;  %p3611_p2 = scmp.lt.u32.totalorder %s3607_s5, %s4576_s13 }
 0x698   :  { %p3613_p3 = pnand %p3611_p2, %p3608_p1 }
 0x69a   :  { %3616 = shalt.err (!%p3613_p3)
}
 0x69b   :  { %2194 = dma.vmem_to_hbm [thread:$0]  %s2189_s23, 512, %s4576_s13, [#allocation11], %s3648_s28, %s3648_s28, %s3649_s29   ;;  %v2149_v3 = vld [vmem:[#allocation8 + $0x2] sm:$0x1]  ;;  %v2156_v4 = vld [vmem:[#allocation8 + $0x3] sm:$0x1] }
 0x69c   :  { %2151 = vrot.lane.b32.xlu0 %v2149_v3, %s3654_s10  ;;  %vm2147_vm10 = vcmask 516352   ;;  %vm2154_vm11 = vcmask 778752   ;;  %vm2161_vm12 = vcmask 1041152   ;;  %s3659_s7 = smov [#allocation17]  }
 0x69d   :  { %s2211_s1 = sshll.u32 %s3659_s7, 4  ;;  %s2212_s1 = int_to_ptr.vmem [resolvable:$true] %s2211_s1 }
 0x69e   :  { %s3617_s13 = scalar_lea.vmem %s2212_s1, 32  ;;  %p3622_p5 = scmp.lt.s32.totalorder %s2212_s1, %s2212_s1 }
 0x69f   :  { %p3618_p4 = scmp.ne.s32.totalorder %s2212_s1, %s3617_s13  ;;  %p3623_p6 = scmp.lt.s32.totalorder %s3617_s13, %s3617_s13 }
 0x6a0   :  { %2158 = vrot.lane.b32.xlu0 %v2156_v4, %s3658_s2 }
 0x6a1   :  { %p3624_p7 = por %p3623_p6, %p3622_p5 }
 0x6a3   :  { %p3625_p8 = pnand %p3624_p7, %p3618_p4 }
 0x6f3   :  { %v2174_v5 = vpop.permute.xlu1 %2173 }
 0x6f4   :  { %v2145_v6 = vpop.permute.xlu0 %2144 }
 0x6f5   :  { %2148 = vst.msk [vmem:[#allocation17] sm:$0x1] %vm2147_vm10, %v2145_v6 }
 0x6fd   :  { %v2168_v7 = vpop.permute.xlu0 %2167 }
 0x6fe   :  { %2170 = vst.msk [vmem:[#allocation17 + $0x1] sm:$0x1] %vm2147_vm10, %v2168_v7  ;;  %v2180_v8 = vpop.permute.xlu1 %2179 }
 0x6ff   :  { %2176 = vst.msk [vmem:[#allocation17 + $0x1] sm:$0x1] %vm2154_vm11, %v2174_v5 }
 0x700   :  { %2182 = vst.msk [vmem:[#allocation17 + $0x1] sm:$0x1] %vm2161_vm12, %v2180_v8 }
 0x70e   :  { %v2152_v9 = vpop.permute.xlu0 %2151 }
 0x70f   :  { %2155 = vst.msk [vmem:[#allocation17] sm:$0x1] %vm2154_vm11, %v2152_v9 }
 0x712   :  { %v2159_v10 = vpop.permute.xlu0 %2158 }
 0x713   :  { %2162 = vst.msk [vmem:[#allocation17] sm:$0x1] %vm2161_vm12, %v2159_v10 }
 0x714   :  { %3628 = shalt.err (!%p3625_p8)
}
 0x715   :  { %s3629_s10 = scalar_lea.hbm %s4578_s15, 32 }
 0x716   :  { %p3630_p9 = scmp.ne.s32.totalorder %s4578_s15, %s3629_s10  ;;  %p3633_p10 = scmp.lt.u32.totalorder %s3629_s10, %s4578_s15 }
 0x718   :  { %p3635_p11 = pnand %p3633_p10, %p3630_p9 }
 0x71a   :  { %3638 = shalt.err (!%p3635_p11)
}
 0x71b   :  { %2214 = dma.vmem_to_hbm [thread:$0]  %s2212_s1, 32, %s4578_s15, [#allocation16]  }
 0x71c   :  { %3643 = dma.done.wait [#allocation11], 512  }
 0x71d   :  { %3644 = vsyncadd [#allocation11], 4294966784 }
 0x71e   :  { %3645 = dma.done.wait [#allocation16], 160  }
 0x71f   :  { %3646 = vsyncadd [#allocation16], 4294967136 }
 0x720   :  { %2224 = vsyncpa [#allocation10], 1 }
 0x721   :  { %2225 = vsyncpa [#allocation13], 1 }
 0x722   :  { %2226 = vsyncpa [#allocation11], 1 }
 0x723   :  { %2227 = vsyncpa [#allocation16], 1 }

</bundles_post_ra>
